<compile_context>
chip_gen: v6e
topology: v6e:2x2x1
jax: 0.10.0
libtpu: 0.0.40
codegen_flags: <defaults>
</compile_context>

<pallas_src>
import functools

import jax
import jax.numpy as jnp
import numpy as np
from jax.experimental import pallas as pl
from jax.experimental.pallas import tpu as pltpu

_OFFH = 8          # sublane-aligned start of valid rows inside a slab (>= 1)
_SLABH_EXTRA = 16  # extra zero rows per batch slab (margin before + after)


# ----------------------------------------------------------------------------
# Fused kernel: conv1(+relu+pool) -> conv2(+relu+pool) -> LSTM -> Linear.
# Layout: channel-last rows, batch folded into the row (sublane) dimension.
# ----------------------------------------------------------------------------
def _fused_kernel(xc_ref, w1_ref, b1_ref, w2b_ref, b2b_ref, pext_ref,
                  wih_ref, whh_ref, bg_ref, wfc_ref, bfc_ref,
                  out_ref,
                  xpe_ref, xpo_ref, xcol2_ref, gx_ref, *, batch):
    f32 = jnp.float32
    B = batch
    BT = xc_ref.shape[0] // 4          # B * T   (T = length pooled twice)
    T = BT // B
    C1 = w1_ref.shape[1]               # 16
    C2 = wih_ref.shape[0]              # 32
    H = whh_ref.shape[0]               # 64
    slab = xpe_ref.shape[0] // B       # padded rows per batch element
    BS = B * slab

    # ---- Conv1 (4-phase im2col from the wrapper) + ReLU: ONE MXU dot -------
    y1 = jnp.dot(xc_ref[...], w1_ref[...], preferred_element_type=f32)
    y1 = jnp.maximum(y1 + b1_ref[...], 0.0)                  # (4*B*T, C1)

    # ---- MaxPool1d(2): contiguous quarter-block maxes (no strided reads) ---
    #   p1[b, 2j]   = max(conv1[4j],   conv1[4j+1]) = max(phase0, phase1)
    #   p1[b, 2j+1] = max(conv1[4j+2], conv1[4j+3]) = max(phase2, phase3)
    p1e = jnp.maximum(y1[0 * BT:1 * BT, :], y1[1 * BT:2 * BT, :])   # (B*T, C1)
    p1o = jnp.maximum(y1[2 * BT:3 * BT, :], y1[3 * BT:4 * BT, :])   # (B*T, C1)

    # ---- Zero-padded per-batch slabs of the even/odd conv2 input (f32) -----
    xpe_ref[...] = jnp.zeros(xpe_ref.shape, f32)
    xpo_ref[...] = jnp.zeros(xpo_ref.shape, f32)
    for b in range(B):                                       # static unroll
        r0 = b * slab + _OFFH                                # 8-aligned rows
        xpe_ref[r0:r0 + T, :] = p1e[b * T:(b + 1) * T, :]
        xpo_ref[r0:r0 + T, :] = p1o[b * T:(b + 1) * T, :]

    # ---- Conv2 + ReLU + MaxPool1d(2) as ONE im2col matmul ------------------
    # xcol2 column group c holds (source, row shift):
    #   c=0:even[r-1] c=1:odd[r-1] c=2:even[r] c=3:odd[r] c=4:even[r+1] c=5:odd[r+1]
    # Even conv2 outputs (positions 2t) use groups 0..4 as taps k=0..4; odd
    # outputs (positions 2t+1) use groups 1..5; both phases come out of one
    # (BS, 6*C1) x (6*C1, 2*C2) dot against the block-shifted weight matrix.
    xcol2_ref[...] = jnp.zeros(xcol2_ref.shape, f32)
    xcol2_ref[1:BS, 0 * C1:1 * C1] = xpe_ref[0:BS - 1, :]    # even, r-1
    xcol2_ref[1:BS, 1 * C1:2 * C1] = xpo_ref[0:BS - 1, :]    # odd,  r-1
    xcol2_ref[0:BS, 2 * C1:3 * C1] = xpe_ref[0:BS, :]        # even, r
    xcol2_ref[0:BS, 3 * C1:4 * C1] = xpo_ref[0:BS, :]        # odd,  r
    xcol2_ref[0:BS - 1, 4 * C1:5 * C1] = xpe_ref[1:BS, :]    # even, r+1
    xcol2_ref[0:BS - 1, 5 * C1:6 * C1] = xpo_ref[1:BS, :]    # odd,  r+1

    y2 = jnp.dot(xcol2_ref[...].astype(jnp.bfloat16), w2b_ref[...],
                 preferred_element_type=f32) + b2b_ref[...]  # (BS, 2*C2)
    # lanes [0:C2) = conv2 at even positions, [C2:2*C2) = odd positions.
    p2 = jnp.maximum(jnp.maximum(y2[:, 0:C2], y2[:, C2:2 * C2]), 0.0)
    # Dropout(p=0.2): identity in eval/inference mode (no op emitted).

    # ---- Extract valid slab rows + permute to time-major (row = t*B + b)
    #      once on the MXU with a constant 0/1 matrix, then the hoisted
    #      LSTM input projection. ---------------------------------------------
    p2_tm = jnp.dot(pext_ref[...], p2.astype(jnp.bfloat16),
                    preferred_element_type=f32)              # (B*T, C2)
    gx_ref[...] = jnp.dot(p2_tm.astype(jnp.bfloat16), wih_ref[...],
                          preferred_element_type=f32) + bg_ref[...]

    # ---- LSTM recurrence (T fully-unrolled steps) ---------------------------
    whh = whh_ref[...]                                       # hoisted (H, 4H)
    lane = jax.lax.broadcasted_iota(jnp.int32, (B, 4 * H), 1)
    is_g = jnp.logical_and(lane >= 2 * H, lane < 3 * H)      # tanh lanes
    pre = jnp.where(is_g, 2.0, 1.0).astype(f32)              # scale pre & post
    shift = jnp.where(is_g, 1.0, 0.0).astype(f32)            # 2*s - 1 on g

    h = jnp.zeros((B, H), f32)
    c = jnp.zeros((B, H), f32)
    for t in range(T):                                       # static unroll
        g_t = gx_ref[t * B:(t + 1) * B, :]                   # contiguous rows
        gates = g_t + jnp.dot(h.astype(jnp.bfloat16), whh,
                              preferred_element_type=f32)
        # One EUP pass: sigmoid on all lanes; tanh(x) = 2*sigmoid(2x) - 1.
        s = jax.nn.sigmoid(gates * pre)
        act = s * pre - shift
        i_g = act[:, 0:H]
        f_g = act[:, H:2 * H]
        g_g = act[:, 2 * H:3 * H]
        o_g = act[:, 3 * H:4 * H]
        c = f_g * c + i_g * g_g
        h = o_g * jnp.tanh(c)
    # TODO(synk): on v5e/v6e, hold W_hh resident on the MXU across the 16
    # steps via pltpu.matmul_push_rhs / matmul_acc_lhs / matmul_pop instead of
    # re-pushing the (H, 4H) weights with every per-step jnp.dot.

    # ---- Linear(H -> 3) on the last timestep --------------------------------
    out_ref[...] = (jnp.dot(h.astype(jnp.bfloat16), wfc_ref[...],
                            preferred_element_type=f32) + bfc_ref[...])


# ----------------------------------------------------------------------------
# Wrapper: input-side layout prep (raw input only) + one pallas_call.
# ----------------------------------------------------------------------------
@jax.jit
def conv_lstm_forward(x_ncl, params):
    """x_ncl: (B, Cin, L) float32 (PyTorch NCL layout) -> (B, 3) float32."""
    B, cin, L = x_ncl.shape
    assert L % 4 == 0, "length must be a multiple of 4 (two maxpool(2) stages)"
    K = params["w1"].shape[0]
    C1 = params["w1"].shape[2]
    C2 = params["w2"].shape[2]
    H = params["w_hh_t"].shape[0]
    n_out = params["w_fc_t"].shape[1]
    T = L // 4
    slab = T + _SLABH_EXTRA            # zero margins before/after valid rows
    BT = B * T
    BS = B * slab

    # ---- conv1 4-phase im2col on the raw input (tiny, one XLA fusion) ------
    x_blc = jnp.transpose(x_ncl, (0, 2, 1))                  # (B, L, Cin)
    pad = (K - 1) // 2
    xp = jnp.pad(x_blc, ((0, 0), (pad, pad), (0, 0)))
    cols = jnp.concatenate([xp[:, k:k + L, :] for k in range(K)], axis=-1)
    # Rows ordered: conv-position phase p (l = 4j+p) major, then batch, then j.
    phases = jnp.stack([cols[:, p::4, :] for p in range(4)], axis=0)
    x_cols = phases.reshape(4 * BT, K * cin).astype(jnp.bfloat16)
    # TODO(synk): for large L, build these patch rows inside the kernel from
    # the raw (B, L, Cin) input to avoid the K-fold im2col HBM inflation.

    # ---- weights as matmul operands (bf16 operands, f32 accumulation) ------
    w1 = params["w1"].reshape(K * cin, C1).astype(jnp.bfloat16)
    b1 = params["b1"].reshape(1, C1)

    w2col = params["w2"].reshape(K * C1, C2)                 # (K*C1, C2)
    w2big = jnp.zeros((6 * C1, 2 * C2), jnp.float32)
    w2big = w2big.at[0:K * C1, 0:C2].set(w2col)              # even-phase taps
    w2big = w2big.at[C1:C1 + K * C1, C2:2 * C2].set(w2col)   # odd-phase taps
    w2big = w2big.astype(jnp.bfloat16)
    b2big = jnp.concatenate([params["b2"], params["b2"]]).reshape(1, 2 * C2)

    # Constant 0/1 matrix: picks the valid slab rows and permutes them to
    # time-major order (output row t*B + b <- slab row b*slab + _OFFH + t).
    rows = np.arange(BT)
    pext_np = np.zeros((BT, BS), np.float32)
    pext_np[rows, (rows % B) * slab + _OFFH + (rows // B)] = 1.0
    pext = jnp.asarray(pext_np, jnp.bfloat16)

    w_ih = params["w_ih_t"].astype(jnp.bfloat16)             # (C2, 4H)
    w_hh = params["w_hh_t"].astype(jnp.bfloat16)             # (H, 4H)
    bg = params["b_gates"].reshape(1, 4 * H)
    w_fc = params["w_fc_t"].astype(jnp.bfloat16)              # (H, n_out)
    bfc = params["b_fc"].reshape(1, n_out)

    kernel = functools.partial(_fused_kernel, batch=B)
    # TODO(synk): on v7x only, add a leading batch grid axis with
    # dimension_semantics=("parallel",) so the second TensorCore takes one
    # batch element; on single-TC v5e/v6e the extra grid steps only add
    # serial overhead, so the single-invocation form is kept here.
    return pl.pallas_call(
        kernel,
        out_shape=jax.ShapeDtypeStruct((B, n_out), jnp.float32),
        scratch_shapes=[
            pltpu.VMEM((BS, C1), jnp.float32),        # even rows of pool1
            pltpu.VMEM((BS, C1), jnp.float32),        # odd rows of pool1
            pltpu.VMEM((BS, 6 * C1), jnp.float32),    # conv2 im2col
            pltpu.VMEM((BT, 4 * H), jnp.float32),     # time-major LSTM x-proj
        ],
    )(x_cols, w1, b1, w2big, b2big, pext, w_ih, w_hh, bg, w_fc, bfc)


# ----------------------------------------------------------------------------
# Pure-JAX f32 reference (numerical sanity check of the fused kernel).
# ----------------------------------------------------------------------------
def ref_forward(x_ncl, params):
    hi = jax.lax.Precision.HIGHEST

    def conv_relu_pool_ref(x, w_kcc, b):
        B, L, _ = x.shape
        K = w_kcc.shape[0]
        pad = (K - 1) // 2
        xp = jnp.pad(x, ((0, 0), (pad, pad), (0, 0)))
        y = b[None, None, :]
        for k in range(K):
            y = y + jnp.einsum("blc,cd->bld", xp[:, k:k + L, :], w_kcc[k],
                               precision=hi)
        y = jnp.maximum(y, 0.0)
        return y.reshape(B, L // 2, 2, -1).max(axis=2)

    x = jnp.transpose(x_ncl, (0, 2, 1))
    x = conv_relu_pool_ref(x, params["w1"], params["b1"])
    x = conv_relu_pool_ref(x, params["w2"], params["b2"])

    B, T, _ = x.shape
    H = params["w_hh_t"].shape[0]

    def step(carry, x_t):
        h, c = carry
        gates = (x_t @ params["w_ih_t"] + h @ params["w_hh_t"]
                 + params["b_gates"][None, :])
        i = jax.nn.sigmoid(gates[:, 0:H])
        f = jax.nn.sigmoid(gates[:, H:2 * H])
        g = jnp.tanh(gates[:, 2 * H:3 * H])
        o = jax.nn.sigmoid(gates[:, 3 * H:4 * H])
        c = f * c + i * g
        h = o * jnp.tanh(c)
        return (h, c), None

    (h, _), _ = jax.lax.scan(step, (jnp.zeros((B, H)), jnp.zeros((B, H))),
                             jnp.transpose(x, (1, 0, 2)))
    return h @ params["w_fc_t"] + params["b_fc"][None, :]


# ----------------------------------------------------------------------------
# Deterministic parameter init (synthetic, matching the nn.Module shapes).
# ----------------------------------------------------------------------------
def init_params(key, cin=3, hidden=64):
    keys = jax.random.split(key, 10)
    s = 0.1
    return {
        # conv weights stored as (K, Cin, Cout) == torch (Cout, Cin, K).T
        "w1": s * jax.random.normal(keys[0], (5, cin, 16), jnp.float32),
        "b1": s * jax.random.normal(keys[1], (16,), jnp.float32),
        "w2": s * jax.random.normal(keys[2], (5, 16, 32), jnp.float32),
        "b2": s * jax.random.normal(keys[3], (32,), jnp.float32),
        # LSTM: torch W_ih (4H, 32), W_hh (4H, H); stored transposed.
        "w_ih_t": s * jax.random.normal(keys[4], (32, 4 * hidden), jnp.float32),
        "w_hh_t": s * jax.random.normal(keys[5], (hidden, 4 * hidden), jnp.float32),
        "b_gates": s * jax.random.normal(keys[6], (4 * hidden,), jnp.float32),
        # fc: torch (3, H) stored transposed.
        "w_fc_t": s * jax.random.normal(keys[7], (hidden, 3), jnp.float32),
        "b_fc": s * jax.random.normal(keys[8], (3,), jnp.float32),
    }


if __name__ == "__main__":
    key = jax.random.PRNGKey(0)
    k_x, k_p = jax.random.split(key)

    B, CIN, L, HIDDEN = 2, 3, 64, 64
    x = jax.random.normal(k_x, (B, CIN, L), jnp.float32)
    params = init_params(k_p, cin=CIN, hidden=HIDDEN)

    out = conv_lstm_forward(x, params)
    out = jax.block_until_ready(out)
    assert out.shape == (B, 3), out.shape

    ref = jax.block_until_ready(ref_forward(x, params))
    np.testing.assert_allclose(np.asarray(out), np.asarray(ref),
                               rtol=5e-2, atol=5e-2)

    print("KERNEL_OK")
</pallas_src>

<mosaic_0001>
module attributes {stable_mosaic.version = 11 : i64} {
  func.func @_fused_kernel(%arg0: memref<128x15xbf16, #tpu.memory_space<vmem>>, %arg1: memref<15x16xbf16, #tpu.memory_space<vmem>>, %arg2: memref<1x16xf32, #tpu.memory_space<vmem>>, %arg3: memref<96x64xbf16, #tpu.memory_space<vmem>>, %arg4: memref<1x64xf32, #tpu.memory_space<vmem>>, %arg5: memref<32x64xbf16, #tpu.memory_space<vmem>>, %arg6: memref<32x256xbf16, #tpu.memory_space<vmem>>, %arg7: memref<64x256xbf16, #tpu.memory_space<vmem>>, %arg8: memref<1x256xf32, #tpu.memory_space<vmem>>, %arg9: memref<64x3xbf16, #tpu.memory_space<vmem>>, %arg10: memref<1x3xf32, #tpu.memory_space<vmem>>, %arg11: memref<2x3xf32, #tpu.memory_space<vmem>>, %arg12: memref<64x16xf32, #tpu.memory_space<vmem>>, %arg13: memref<64x16xf32, #tpu.memory_space<vmem>>, %arg14: memref<64x96xf32, #tpu.memory_space<vmem>>, %arg15: memref<32x256xf32, #tpu.memory_space<vmem>>) attributes {dimension_semantics = [], scalar_prefetch = 0 : i64, scratch_operands = 4 : i64, tpu.core_type = #tpu.core_type<tc>} {
    %c0 = arith.constant 0 : index
    %c0_0 = arith.constant 0 : index
    %0 = vector.load %arg0[%c0, %c0_0] : memref<128x15xbf16, #tpu.memory_space<vmem>>, vector<128x15xbf16>
    %c0_1 = arith.constant 0 : index
    %c0_2 = arith.constant 0 : index
    %1 = vector.load %arg1[%c0_1, %c0_2] : memref<15x16xbf16, #tpu.memory_space<vmem>>, vector<15x16xbf16>
    %cst = arith.constant dense<0.000000e+00> : vector<128x16xf32>
    %2 = tpu.matmul %0, %1, %cst {dimension_numbers = #tpu.dot_dimension_numbers<[1], [0], [0], [1], [0, 0, 1, 1], [], []>} : vector<128x15xbf16>, vector<15x16xbf16>, vector<128x16xf32> -> vector<128x16xf32>
    %c0_3 = arith.constant 0 : index
    %c0_4 = arith.constant 0 : index
    %3 = vector.load %arg2[%c0_3, %c0_4] : memref<1x16xf32, #tpu.memory_space<vmem>>, vector<1x16xf32>
    %4 = vector.broadcast %3 : vector<1x16xf32> to vector<128x16xf32>
    %5 = arith.addf %2, %4 : vector<128x16xf32>
    %cst_5 = arith.constant 0.000000e+00 : f32
    %6 = vector.broadcast %cst_5 : f32 to vector<128x16xf32>
    %7 = arith.maximumf %5, %6 : vector<128x16xf32>
    %8 = vector.extract_strided_slice %7 {offsets = [0, 0], sizes = [32, 16], strides = [1, 1]} : vector<128x16xf32> to vector<32x16xf32>
    %9 = vector.extract_strided_slice %7 {offsets = [32, 0], sizes = [32, 16], strides = [1, 1]} : vector<128x16xf32> to vector<32x16xf32>
    %10 = arith.maximumf %8, %9 : vector<32x16xf32>
    %11 = vector.extract_strided_slice %7 {offsets = [64, 0], sizes = [32, 16], strides = [1, 1]} : vector<128x16xf32> to vector<32x16xf32>
    %12 = vector.extract_strided_slice %7 {offsets = [96, 0], sizes = [32, 16], strides = [1, 1]} : vector<128x16xf32> to vector<32x16xf32>
    %13 = arith.maximumf %11, %12 : vector<32x16xf32>
    %cst_6 = arith.constant 0.000000e+00 : f32
    %14 = vector.broadcast %cst_6 : f32 to vector<64x16xf32>
    %c0_7 = arith.constant 0 : index
    %c0_8 = arith.constant 0 : index
    %15 = vector.load %arg12[%c0_7, %c0_8] : memref<64x16xf32, #tpu.memory_space<vmem>>, vector<64x16xf32>
    tpu.vector_store %arg12[%c0_7, %c0_8], %14 {strides = array<i32>} : memref<64x16xf32, #tpu.memory_space<vmem>>, vector<64x16xf32>,
    %cst_9 = arith.constant 0.000000e+00 : f32
    %16 = vector.broadcast %cst_9 : f32 to vector<64x16xf32>
    %c0_10 = arith.constant 0 : index
    %c0_11 = arith.constant 0 : index
    %17 = vector.load %arg13[%c0_10, %c0_11] : memref<64x16xf32, #tpu.memory_space<vmem>>, vector<64x16xf32>
    tpu.vector_store %arg13[%c0_10, %c0_11], %16 {strides = array<i32>} : memref<64x16xf32, #tpu.memory_space<vmem>>, vector<64x16xf32>,
    %18 = vector.extract_strided_slice %10 {offsets = [0, 0], sizes = [16, 16], strides = [1, 1]} : vector<32x16xf32> to vector<16x16xf32>
    %c8 = arith.constant 8 : index
    %c0_12 = arith.constant 0 : index
    %19 = vector.load %arg12[%c8, %c0_12] : memref<64x16xf32, #tpu.memory_space<vmem>>, vector<16x16xf32>
    tpu.vector_store %arg12[%c8, %c0_12], %18 {strides = array<i32>} : memref<64x16xf32, #tpu.memory_space<vmem>>, vector<16x16xf32>,
    %20 = vector.extract_strided_slice %13 {offsets = [0, 0], sizes = [16, 16], strides = [1, 1]} : vector<32x16xf32> to vector<16x16xf32>
    %c8_13 = arith.constant 8 : index
    %c0_14 = arith.constant 0 : index
    %21 = vector.load %arg13[%c8_13, %c0_14] : memref<64x16xf32, #tpu.memory_space<vmem>>, vector<16x16xf32>
    tpu.vector_store %arg13[%c8_13, %c0_14], %20 {strides = array<i32>} : memref<64x16xf32, #tpu.memory_space<vmem>>, vector<16x16xf32>,
    %22 = vector.extract_strided_slice %10 {offsets = [16, 0], sizes = [16, 16], strides = [1, 1]} : vector<32x16xf32> to vector<16x16xf32>
    %c40 = arith.constant 40 : index
    %c0_15 = arith.constant 0 : index
    %23 = vector.load %arg12[%c40, %c0_15] : memref<64x16xf32, #tpu.memory_space<vmem>>, vector<16x16xf32>
    tpu.vector_store %arg12[%c40, %c0_15], %22 {strides = array<i32>} : memref<64x16xf32, #tpu.memory_space<vmem>>, vector<16x16xf32>,
    %24 = vector.extract_strided_slice %13 {offsets = [16, 0], sizes = [16, 16], strides = [1, 1]} : vector<32x16xf32> to vector<16x16xf32>
    %c40_16 = arith.constant 40 : index
    %c0_17 = arith.constant 0 : index
    %25 = vector.load %arg13[%c40_16, %c0_17] : memref<64x16xf32, #tpu.memory_space<vmem>>, vector<16x16xf32>
    tpu.vector_store %arg13[%c40_16, %c0_17], %24 {strides = array<i32>} : memref<64x16xf32, #tpu.memory_space<vmem>>, vector<16x16xf32>,
    %cst_18 = arith.constant 0.000000e+00 : f32
    %26 = vector.broadcast %cst_18 : f32 to vector<64x96xf32>
    %c0_19 = arith.constant 0 : index
    %c0_20 = arith.constant 0 : index
    %27 = vector.load %arg14[%c0_19, %c0_20] : memref<64x96xf32, #tpu.memory_space<vmem>>, vector<64x96xf32>
    tpu.vector_store %arg14[%c0_19, %c0_20], %26 {strides = array<i32>} : memref<64x96xf32, #tpu.memory_space<vmem>>, vector<64x96xf32>,
    %c0_21 = arith.constant 0 : index
    %c0_22 = arith.constant 0 : index
    %28 = vector.load %arg12[%c0_21, %c0_22] : memref<64x16xf32, #tpu.memory_space<vmem>>, vector<63x16xf32>
    %c1 = arith.constant 1 : index
    %c0_23 = arith.constant 0 : index
    %29 = vector.load %arg14[%c1, %c0_23] : memref<64x96xf32, #tpu.memory_space<vmem>>, vector<63x16xf32>
    tpu.vector_store %arg14[%c1, %c0_23], %28 {strides = array<i32>} : memref<64x96xf32, #tpu.memory_space<vmem>>, vector<63x16xf32>,
    %c0_24 = arith.constant 0 : index
    %c0_25 = arith.constant 0 : index
    %30 = vector.load %arg13[%c0_24, %c0_25] : memref<64x16xf32, #tpu.memory_space<vmem>>, vector<63x16xf32>
    %c1_26 = arith.constant 1 : index
    %c16 = arith.constant 16 : index
    %31 = vector.load %arg14[%c1_26, %c16] : memref<64x96xf32, #tpu.memory_space<vmem>>, vector<63x16xf32>
    tpu.vector_store %arg14[%c1_26, %c16], %30 {strides = array<i32>} : memref<64x96xf32, #tpu.memory_space<vmem>>, vector<63x16xf32>,
    %c0_27 = arith.constant 0 : index
    %c0_28 = arith.constant 0 : index
    %32 = vector.load %arg12[%c0_27, %c0_28] : memref<64x16xf32, #tpu.memory_space<vmem>>, vector<64x16xf32>
    %c0_29 = arith.constant 0 : index
    %c32 = arith.constant 32 : index
    %33 = vector.load %arg14[%c0_29, %c32] : memref<64x96xf32, #tpu.memory_space<vmem>>, vector<64x16xf32>
    tpu.vector_store %arg14[%c0_29, %c32], %32 {strides = array<i32>} : memref<64x96xf32, #tpu.memory_space<vmem>>, vector<64x16xf32>,
    %c0_30 = arith.constant 0 : index
    %c0_31 = arith.constant 0 : index
    %34 = vector.load %arg13[%c0_30, %c0_31] : memref<64x16xf32, #tpu.memory_space<vmem>>, vector<64x16xf32>
    %c0_32 = arith.constant 0 : index
    %c48 = arith.constant 48 : index
    %35 = vector.load %arg14[%c0_32, %c48] : memref<64x96xf32, #tpu.memory_space<vmem>>, vector<64x16xf32>
    tpu.vector_store %arg14[%c0_32, %c48], %34 {strides = array<i32>} : memref<64x96xf32, #tpu.memory_space<vmem>>, vector<64x16xf32>,
    %c1_33 = arith.constant 1 : index
    %c0_34 = arith.constant 0 : index
    %36 = vector.load %arg12[%c1_33, %c0_34] : memref<64x16xf32, #tpu.memory_space<vmem>>, vector<63x16xf32>
    %c0_35 = arith.constant 0 : index
    %c64 = arith.constant 64 : index
    %37 = vector.load %arg14[%c0_35, %c64] : memref<64x96xf32, #tpu.memory_space<vmem>>, vector<63x16xf32>
    tpu.vector_store %arg14[%c0_35, %c64], %36 {strides = array<i32>} : memref<64x96xf32, #tpu.memory_space<vmem>>, vector<63x16xf32>,
    %c1_36 = arith.constant 1 : index
    %c0_37 = arith.constant 0 : index
    %38 = vector.load %arg13[%c1_36, %c0_37] : memref<64x16xf32, #tpu.memory_space<vmem>>, vector<63x16xf32>
    %c0_38 = arith.constant 0 : index
    %c80 = arith.constant 80 : index
    %39 = vector.load %arg14[%c0_38, %c80] : memref<64x96xf32, #tpu.memory_space<vmem>>, vector<63x16xf32>
    tpu.vector_store %arg14[%c0_38, %c80], %38 {strides = array<i32>} : memref<64x96xf32, #tpu.memory_space<vmem>>, vector<63x16xf32>,
    %c0_39 = arith.constant 0 : index
    %c0_40 = arith.constant 0 : index
    %40 = vector.load %arg14[%c0_39, %c0_40] : memref<64x96xf32, #tpu.memory_space<vmem>>, vector<64x96xf32>
    %41 = arith.truncf %40 : vector<64x96xf32> to vector<64x96xbf16>
    %c0_41 = arith.constant 0 : index
    %c0_42 = arith.constant 0 : index
    %42 = vector.load %arg3[%c0_41, %c0_42] : memref<96x64xbf16, #tpu.memory_space<vmem>>, vector<96x64xbf16>
    %cst_43 = arith.constant dense<0.000000e+00> : vector<64x64xf32>
    %43 = tpu.matmul %41, %42, %cst_43 {dimension_numbers = #tpu.dot_dimension_numbers<[1], [0], [0], [1], [0, 0, 1, 1], [], []>} : vector<64x96xbf16>, vector<96x64xbf16>, vector<64x64xf32> -> vector<64x64xf32>
    %c0_44 = arith.constant 0 : index
    %c0_45 = arith.constant 0 : index
    %44 = vector.load %arg4[%c0_44, %c0_45] : memref<1x64xf32, #tpu.memory_space<vmem>>, vector<1x64xf32>
    %45 = vector.broadcast %44 : vector<1x64xf32> to vector<64x64xf32>
    %46 = arith.addf %43, %45 : vector<64x64xf32>
    %47 = vector.extract_strided_slice %46 {offsets = [0, 0], sizes = [64, 32], strides = [1, 1]} : vector<64x64xf32> to vector<64x32xf32>
    %48 = vector.extract_strided_slice %46 {offsets = [0, 32], sizes = [64, 32], strides = [1, 1]} : vector<64x64xf32> to vector<64x32xf32>
    %49 = arith.maximumf %47, %48 : vector<64x32xf32>
    %cst_46 = arith.constant 0.000000e+00 : f32
    %50 = vector.broadcast %cst_46 : f32 to vector<64x32xf32>
    %51 = arith.maximumf %49, %50 : vector<64x32xf32>
    %c0_47 = arith.constant 0 : index
    %c0_48 = arith.constant 0 : index
    %52 = vector.load %arg5[%c0_47, %c0_48] : memref<32x64xbf16, #tpu.memory_space<vmem>>, vector<32x64xbf16>
    %53 = arith.truncf %51 : vector<64x32xf32> to vector<64x32xbf16>
    %cst_49 = arith.constant dense<0.000000e+00> : vector<32x32xf32>
    %54 = tpu.matmul %52, %53, %cst_49 {dimension_numbers = #tpu.dot_dimension_numbers<[1], [0], [0], [1], [0, 0, 1, 1], [], []>} : vector<32x64xbf16>, vector<64x32xbf16>, vector<32x32xf32> -> vector<32x32xf32>
    %55 = arith.truncf %54 : vector<32x32xf32> to vector<32x32xbf16>
    %c0_50 = arith.constant 0 : index
    %c0_51 = arith.constant 0 : index
    %56 = vector.load %arg6[%c0_50, %c0_51] : memref<32x256xbf16, #tpu.memory_space<vmem>>, vector<32x256xbf16>
    %cst_52 = arith.constant dense<0.000000e+00> : vector<32x256xf32>
    %57 = tpu.matmul %55, %56, %cst_52 {dimension_numbers = #tpu.dot_dimension_numbers<[1], [0], [0], [1], [0, 0, 1, 1], [], []>} : vector<32x32xbf16>, vector<32x256xbf16>, vector<32x256xf32> -> vector<32x256xf32>
    %c0_53 = arith.constant 0 : index
    %c0_54 = arith.constant 0 : index
    %58 = vector.load %arg8[%c0_53, %c0_54] : memref<1x256xf32, #tpu.memory_space<vmem>>, vector<1x256xf32>
    %59 = vector.broadcast %58 : vector<1x256xf32> to vector<32x256xf32>
    %60 = arith.addf %57, %59 : vector<32x256xf32>
    %c0_55 = arith.constant 0 : index
    %c0_56 = arith.constant 0 : index
    %61 = vector.load %arg15[%c0_55, %c0_56] : memref<32x256xf32, #tpu.memory_space<vmem>>, vector<32x256xf32>
    tpu.vector_store %arg15[%c0_55, %c0_56], %60 {strides = array<i32>} : memref<32x256xf32, #tpu.memory_space<vmem>>, vector<32x256xf32>,
    %c0_57 = arith.constant 0 : index
    %c0_58 = arith.constant 0 : index
    %62 = vector.load %arg7[%c0_57, %c0_58] : memref<64x256xbf16, #tpu.memory_space<vmem>>, vector<64x256xbf16>
    %63 = tpu.iota {dimensions = array<i32: 1>} : vector<2x256xi32>
    %c128_i32 = arith.constant 128 : i32
    %64 = vector.broadcast %c128_i32 : i32 to vector<2x256xi32>
    %65 = arith.cmpi sge, %63, %64 : vector<2x256xi32>
    %c192_i32 = arith.constant 192 : i32
    %66 = vector.broadcast %c192_i32 : i32 to vector<2x256xi32>
    %67 = arith.cmpi slt, %63, %66 : vector<2x256xi32>
    %68 = arith.andi %65, %67 : vector<2x256xi1>
    %cst_59 = arith.constant 2.000000e+00 : f32
    %cst_60 = arith.constant 1.000000e+00 : f32
    %69 = vector.broadcast %cst_59 : f32 to vector<2x256xf32>
    %70 = vector.broadcast %cst_60 : f32 to vector<2x256xf32>
    %71 = arith.select %68, %69, %70 : vector<2x256xi1>, vector<2x256xf32>
    %cst_61 = arith.constant 1.000000e+00 : f32
    %cst_62 = arith.constant 0.000000e+00 : f32
    %72 = vector.broadcast %cst_61 : f32 to vector<2x256xf32>
    %73 = vector.broadcast %cst_62 : f32 to vector<2x256xf32>
    %74 = arith.select %68, %72, %73 : vector<2x256xi1>, vector<2x256xf32>
    %cst_63 = arith.constant 0.000000e+00 : f32
    %75 = vector.broadcast %cst_63 : f32 to vector<2x64xf32>
    %cst_64 = arith.constant 0.000000e+00 : f32
    %76 = vector.broadcast %cst_64 : f32 to vector<2x64xf32>
    %c0_65 = arith.constant 0 : index
    %c0_66 = arith.constant 0 : index
    %77 = vector.load %arg15[%c0_65, %c0_66] : memref<32x256xf32, #tpu.memory_space<vmem>>, vector<2x256xf32>
    %78 = arith.truncf %75 : vector<2x64xf32> to vector<2x64xbf16>
    %cst_67 = arith.constant dense<0.000000e+00> : vector<2x256xf32>
    %79 = tpu.matmul %78, %62, %cst_67 {dimension_numbers = #tpu.dot_dimension_numbers<[1], [0], [0], [1], [0, 0, 1, 1], [], []>} : vector<2x64xbf16>, vector<64x256xbf16>, vector<2x256xf32> -> vector<2x256xf32>
    %80 = arith.addf %77, %79 : vector<2x256xf32>
    %81 = arith.mulf %80, %71 : vector<2x256xf32>
    %82 = arith.negf %81 : vector<2x256xf32>
    %83 = math.exp %82 : vector<2x256xf32>
    %cst_68 = arith.constant 1.000000e+00 : f32
    %84 = vector.broadcast %cst_68 : f32 to vector<2x256xf32>
    %85 = arith.addf %84, %83 : vector<2x256xf32>
    %86 = arith.divf %84, %85 : vector<2x256xf32>
    %87 = arith.mulf %86, %71 : vector<2x256xf32>
    %88 = arith.subf %87, %74 : vector<2x256xf32>
    %89 = vector.extract_strided_slice %88 {offsets = [0, 0], sizes = [2, 64], strides = [1, 1]} : vector<2x256xf32> to vector<2x64xf32>
    %90 = vector.extract_strided_slice %88 {offsets = [0, 64], sizes = [2, 64], strides = [1, 1]} : vector<2x256xf32> to vector<2x64xf32>
    %91 = vector.extract_strided_slice %88 {offsets = [0, 128], sizes = [2, 64], strides = [1, 1]} : vector<2x256xf32> to vector<2x64xf32>
    %92 = vector.extract_strided_slice %88 {offsets = [0, 192], sizes = [2, 64], strides = [1, 1]} : vector<2x256xf32> to vector<2x64xf32>
    %93 = arith.mulf %90, %76 : vector<2x64xf32>
    %94 = arith.mulf %89, %91 : vector<2x64xf32>
    %95 = arith.addf %93, %94 : vector<2x64xf32>
    %96 = math.tanh %95 : vector<2x64xf32>
    %97 = arith.mulf %92, %96 : vector<2x64xf32>
    %c2 = arith.constant 2 : index
    %c0_69 = arith.constant 0 : index
    %98 = vector.load %arg15[%c2, %c0_69] : memref<32x256xf32, #tpu.memory_space<vmem>>, vector<2x256xf32>
    %99 = arith.truncf %97 : vector<2x64xf32> to vector<2x64xbf16>
    %cst_70 = arith.constant dense<0.000000e+00> : vector<2x256xf32>
    %100 = tpu.matmul %99, %62, %cst_70 {dimension_numbers = #tpu.dot_dimension_numbers<[1], [0], [0], [1], [0, 0, 1, 1], [], []>} : vector<2x64xbf16>, vector<64x256xbf16>, vector<2x256xf32> -> vector<2x256xf32>
    %101 = arith.addf %98, %100 : vector<2x256xf32>
    %102 = arith.mulf %101, %71 : vector<2x256xf32>
    %103 = arith.negf %102 : vector<2x256xf32>
    %104 = math.exp %103 : vector<2x256xf32>
    %cst_71 = arith.constant 1.000000e+00 : f32
    %105 = vector.broadcast %cst_71 : f32 to vector<2x256xf32>
    %106 = arith.addf %105, %104 : vector<2x256xf32>
    %107 = arith.divf %105, %106 : vector<2x256xf32>
    %108 = arith.mulf %107, %71 : vector<2x256xf32>
    %109 = arith.subf %108, %74 : vector<2x256xf32>
    %110 = vector.extract_strided_slice %109 {offsets = [0, 0], sizes = [2, 64], strides = [1, 1]} : vector<2x256xf32> to vector<2x64xf32>
    %111 = vector.extract_strided_slice %109 {offsets = [0, 64], sizes = [2, 64], strides = [1, 1]} : vector<2x256xf32> to vector<2x64xf32>
    %112 = vector.extract_strided_slice %109 {offsets = [0, 128], sizes = [2, 64], strides = [1, 1]} : vector<2x256xf32> to vector<2x64xf32>
    %113 = vector.extract_strided_slice %109 {offsets = [0, 192], sizes = [2, 64], strides = [1, 1]} : vector<2x256xf32> to vector<2x64xf32>
    %114 = arith.mulf %111, %95 : vector<2x64xf32>
    %115 = arith.mulf %110, %112 : vector<2x64xf32>
    %116 = arith.addf %114, %115 : vector<2x64xf32>
    %117 = math.tanh %116 : vector<2x64xf32>
    %118 = arith.mulf %113, %117 : vector<2x64xf32>
    %c4 = arith.constant 4 : index
    %c0_72 = arith.constant 0 : index
    %119 = vector.load %arg15[%c4, %c0_72] : memref<32x256xf32, #tpu.memory_space<vmem>>, vector<2x256xf32>
    %120 = arith.truncf %118 : vector<2x64xf32> to vector<2x64xbf16>
    %cst_73 = arith.constant dense<0.000000e+00> : vector<2x256xf32>
    %121 = tpu.matmul %120, %62, %cst_73 {dimension_numbers = #tpu.dot_dimension_numbers<[1], [0], [0], [1], [0, 0, 1, 1], [], []>} : vector<2x64xbf16>, vector<64x256xbf16>, vector<2x256xf32> -> vector<2x256xf32>
    %122 = arith.addf %119, %121 : vector<2x256xf32>
    %123 = arith.mulf %122, %71 : vector<2x256xf32>
    %124 = arith.negf %123 : vector<2x256xf32>
    %125 = math.exp %124 : vector<2x256xf32>
    %cst_74 = arith.constant 1.000000e+00 : f32
    %126 = vector.broadcast %cst_74 : f32 to vector<2x256xf32>
    %127 = arith.addf %126, %125 : vector<2x256xf32>
    %128 = arith.divf %126, %127 : vector<2x256xf32>
    %129 = arith.mulf %128, %71 : vector<2x256xf32>
    %130 = arith.subf %129, %74 : vector<2x256xf32>
    %131 = vector.extract_strided_slice %130 {offsets = [0, 0], sizes = [2, 64], strides = [1, 1]} : vector<2x256xf32> to vector<2x64xf32>
    %132 = vector.extract_strided_slice %130 {offsets = [0, 64], sizes = [2, 64], strides = [1, 1]} : vector<2x256xf32> to vector<2x64xf32>
    %133 = vector.extract_strided_slice %130 {offsets = [0, 128], sizes = [2, 64], strides = [1, 1]} : vector<2x256xf32> to vector<2x64xf32>
    %134 = vector.extract_strided_slice %130 {offsets = [0, 192], sizes = [2, 64], strides = [1, 1]} : vector<2x256xf32> to vector<2x64xf32>
    %135 = arith.mulf %132, %116 : vector<2x64xf32>
    %136 = arith.mulf %131, %133 : vector<2x64xf32>
    %137 = arith.addf %135, %136 : vector<2x64xf32>
    %138 = math.tanh %137 : vector<2x64xf32>
    %139 = arith.mulf %134, %138 : vector<2x64xf32>
    %c6 = arith.constant 6 : index
    %c0_75 = arith.constant 0 : index
    %140 = vector.load %arg15[%c6, %c0_75] : memref<32x256xf32, #tpu.memory_space<vmem>>, vector<2x256xf32>
    %141 = arith.truncf %139 : vector<2x64xf32> to vector<2x64xbf16>
    %cst_76 = arith.constant dense<0.000000e+00> : vector<2x256xf32>
    %142 = tpu.matmul %141, %62, %cst_76 {dimension_numbers = #tpu.dot_dimension_numbers<[1], [0], [0], [1], [0, 0, 1, 1], [], []>} : vector<2x64xbf16>, vector<64x256xbf16>, vector<2x256xf32> -> vector<2x256xf32>
    %143 = arith.addf %140, %142 : vector<2x256xf32>
    %144 = arith.mulf %143, %71 : vector<2x256xf32>
    %145 = arith.negf %144 : vector<2x256xf32>
    %146 = math.exp %145 : vector<2x256xf32>
    %cst_77 = arith.constant 1.000000e+00 : f32
    %147 = vector.broadcast %cst_77 : f32 to vector<2x256xf32>
    %148 = arith.addf %147, %146 : vector<2x256xf32>
    %149 = arith.divf %147, %148 : vector<2x256xf32>
    %150 = arith.mulf %149, %71 : vector<2x256xf32>
    %151 = arith.subf %150, %74 : vector<2x256xf32>
    %152 = vector.extract_strided_slice %151 {offsets = [0, 0], sizes = [2, 64], strides = [1, 1]} : vector<2x256xf32> to vector<2x64xf32>
    %153 = vector.extract_strided_slice %151 {offsets = [0, 64], sizes = [2, 64], strides = [1, 1]} : vector<2x256xf32> to vector<2x64xf32>
    %154 = vector.extract_strided_slice %151 {offsets = [0, 128], sizes = [2, 64], strides = [1, 1]} : vector<2x256xf32> to vector<2x64xf32>
    %155 = vector.extract_strided_slice %151 {offsets = [0, 192], sizes = [2, 64], strides = [1, 1]} : vector<2x256xf32> to vector<2x64xf32>
    %156 = arith.mulf %153, %137 : vector<2x64xf32>
    %157 = arith.mulf %152, %154 : vector<2x64xf32>
    %158 = arith.addf %156, %157 : vector<2x64xf32>
    %159 = math.tanh %158 : vector<2x64xf32>
    %160 = arith.mulf %155, %159 : vector<2x64xf32>
    %c8_78 = arith.constant 8 : index
    %c0_79 = arith.constant 0 : index
    %161 = vector.load %arg15[%c8_78, %c0_79] : memref<32x256xf32, #tpu.memory_space<vmem>>, vector<2x256xf32>
    %162 = arith.truncf %160 : vector<2x64xf32> to vector<2x64xbf16>
    %cst_80 = arith.constant dense<0.000000e+00> : vector<2x256xf32>
    %163 = tpu.matmul %162, %62, %cst_80 {dimension_numbers = #tpu.dot_dimension_numbers<[1], [0], [0], [1], [0, 0, 1, 1], [], []>} : vector<2x64xbf16>, vector<64x256xbf16>, vector<2x256xf32> -> vector<2x256xf32>
    %164 = arith.addf %161, %163 : vector<2x256xf32>
    %165 = arith.mulf %164, %71 : vector<2x256xf32>
    %166 = arith.negf %165 : vector<2x256xf32>
    %167 = math.exp %166 : vector<2x256xf32>
    %cst_81 = arith.constant 1.000000e+00 : f32
    %168 = vector.broadcast %cst_81 : f32 to vector<2x256xf32>
    %169 = arith.addf %168, %167 : vector<2x256xf32>
    %170 = arith.divf %168, %169 : vector<2x256xf32>
    %171 = arith.mulf %170, %71 : vector<2x256xf32>
    %172 = arith.subf %171, %74 : vector<2x256xf32>
    %173 = vector.extract_strided_slice %172 {offsets = [0, 0], sizes = [2, 64], strides = [1, 1]} : vector<2x256xf32> to vector<2x64xf32>
    %174 = vector.extract_strided_slice %172 {offsets = [0, 64], sizes = [2, 64], strides = [1, 1]} : vector<2x256xf32> to vector<2x64xf32>
    %175 = vector.extract_strided_slice %172 {offsets = [0, 128], sizes = [2, 64], strides = [1, 1]} : vector<2x256xf32> to vector<2x64xf32>
    %176 = vector.extract_strided_slice %172 {offsets = [0, 192], sizes = [2, 64], strides = [1, 1]} : vector<2x256xf32> to vector<2x64xf32>
    %177 = arith.mulf %174, %158 : vector<2x64xf32>
    %178 = arith.mulf %173, %175 : vector<2x64xf32>
    %179 = arith.addf %177, %178 : vector<2x64xf32>
    %180 = math.tanh %179 : vector<2x64xf32>
    %181 = arith.mulf %176, %180 : vector<2x64xf32>
    %c10 = arith.constant 10 : index
    %c0_82 = arith.constant 0 : index
    %182 = vector.load %arg15[%c10, %c0_82] : memref<32x256xf32, #tpu.memory_space<vmem>>, vector<2x256xf32>
    %183 = arith.truncf %181 : vector<2x64xf32> to vector<2x64xbf16>
    %cst_83 = arith.constant dense<0.000000e+00> : vector<2x256xf32>
    %184 = tpu.matmul %183, %62, %cst_83 {dimension_numbers = #tpu.dot_dimension_numbers<[1], [0], [0], [1], [0, 0, 1, 1], [], []>} : vector<2x64xbf16>, vector<64x256xbf16>, vector<2x256xf32> -> vector<2x256xf32>
    %185 = arith.addf %182, %184 : vector<2x256xf32>
    %186 = arith.mulf %185, %71 : vector<2x256xf32>
    %187 = arith.negf %186 : vector<2x256xf32>
    %188 = math.exp %187 : vector<2x256xf32>
    %cst_84 = arith.constant 1.000000e+00 : f32
    %189 = vector.broadcast %cst_84 : f32 to vector<2x256xf32>
    %190 = arith.addf %189, %188 : vector<2x256xf32>
    %191 = arith.divf %189, %190 : vector<2x256xf32>
    %192 = arith.mulf %191, %71 : vector<2x256xf32>
    %193 = arith.subf %192, %74 : vector<2x256xf32>
    %194 = vector.extract_strided_slice %193 {offsets = [0, 0], sizes = [2, 64], strides = [1, 1]} : vector<2x256xf32> to vector<2x64xf32>
    %195 = vector.extract_strided_slice %193 {offsets = [0, 64], sizes = [2, 64], strides = [1, 1]} : vector<2x256xf32> to vector<2x64xf32>
    %196 = vector.extract_strided_slice %193 {offsets = [0, 128], sizes = [2, 64], strides = [1, 1]} : vector<2x256xf32> to vector<2x64xf32>
    %197 = vector.extract_strided_slice %193 {offsets = [0, 192], sizes = [2, 64], strides = [1, 1]} : vector<2x256xf32> to vector<2x64xf32>
    %198 = arith.mulf %195, %179 : vector<2x64xf32>
    %199 = arith.mulf %194, %196 : vector<2x64xf32>
    %200 = arith.addf %198, %199 : vector<2x64xf32>
    %201 = math.tanh %200 : vector<2x64xf32>
    %202 = arith.mulf %197, %201 : vector<2x64xf32>
    %c12 = arith.constant 12 : index
    %c0_85 = arith.constant 0 : index
    %203 = vector.load %arg15[%c12, %c0_85] : memref<32x256xf32, #tpu.memory_space<vmem>>, vector<2x256xf32>
    %204 = arith.truncf %202 : vector<2x64xf32> to vector<2x64xbf16>
    %cst_86 = arith.constant dense<0.000000e+00> : vector<2x256xf32>
    %205 = tpu.matmul %204, %62, %cst_86 {dimension_numbers = #tpu.dot_dimension_numbers<[1], [0], [0], [1], [0, 0, 1, 1], [], []>} : vector<2x64xbf16>, vector<64x256xbf16>, vector<2x256xf32> -> vector<2x256xf32>
    %206 = arith.addf %203, %205 : vector<2x256xf32>
    %207 = arith.mulf %206, %71 : vector<2x256xf32>
    %208 = arith.negf %207 : vector<2x256xf32>
    %209 = math.exp %208 : vector<2x256xf32>
    %cst_87 = arith.constant 1.000000e+00 : f32
    %210 = vector.broadcast %cst_87 : f32 to vector<2x256xf32>
    %211 = arith.addf %210, %209 : vector<2x256xf32>
    %212 = arith.divf %210, %211 : vector<2x256xf32>
    %213 = arith.mulf %212, %71 : vector<2x256xf32>
    %214 = arith.subf %213, %74 : vector<2x256xf32>
    %215 = vector.extract_strided_slice %214 {offsets = [0, 0], sizes = [2, 64], strides = [1, 1]} : vector<2x256xf32> to vector<2x64xf32>
    %216 = vector.extract_strided_slice %214 {offsets = [0, 64], sizes = [2, 64], strides = [1, 1]} : vector<2x256xf32> to vector<2x64xf32>
    %217 = vector.extract_strided_slice %214 {offsets = [0, 128], sizes = [2, 64], strides = [1, 1]} : vector<2x256xf32> to vector<2x64xf32>
    %218 = vector.extract_strided_slice %214 {offsets = [0, 192], sizes = [2, 64], strides = [1, 1]} : vector<2x256xf32> to vector<2x64xf32>
    %219 = arith.mulf %216, %200 : vector<2x64xf32>
    %220 = arith.mulf %215, %217 : vector<2x64xf32>
    %221 = arith.addf %219, %220 : vector<2x64xf32>
    %222 = math.tanh %221 : vector<2x64xf32>
    %223 = arith.mulf %218, %222 : vector<2x64xf32>
    %c14 = arith.constant 14 : index
    %c0_88 = arith.constant 0 : index
    %224 = vector.load %arg15[%c14, %c0_88] : memref<32x256xf32, #tpu.memory_space<vmem>>, vector<2x256xf32>
    %225 = arith.truncf %223 : vector<2x64xf32> to vector<2x64xbf16>
    %cst_89 = arith.constant dense<0.000000e+00> : vector<2x256xf32>
    %226 = tpu.matmul %225, %62, %cst_89 {dimension_numbers = #tpu.dot_dimension_numbers<[1], [0], [0], [1], [0, 0, 1, 1], [], []>} : vector<2x64xbf16>, vector<64x256xbf16>, vector<2x256xf32> -> vector<2x256xf32>
    %227 = arith.addf %224, %226 : vector<2x256xf32>
    %228 = arith.mulf %227, %71 : vector<2x256xf32>
    %229 = arith.negf %228 : vector<2x256xf32>
    %230 = math.exp %229 : vector<2x256xf32>
    %cst_90 = arith.constant 1.000000e+00 : f32
    %231 = vector.broadcast %cst_90 : f32 to vector<2x256xf32>
    %232 = arith.addf %231, %230 : vector<2x256xf32>
    %233 = arith.divf %231, %232 : vector<2x256xf32>
    %234 = arith.mulf %233, %71 : vector<2x256xf32>
    %235 = arith.subf %234, %74 : vector<2x256xf32>
    %236 = vector.extract_strided_slice %235 {offsets = [0, 0], sizes = [2, 64], strides = [1, 1]} : vector<2x256xf32> to vector<2x64xf32>
    %237 = vector.extract_strided_slice %235 {offsets = [0, 64], sizes = [2, 64], strides = [1, 1]} : vector<2x256xf32> to vector<2x64xf32>
    %238 = vector.extract_strided_slice %235 {offsets = [0, 128], sizes = [2, 64], strides = [1, 1]} : vector<2x256xf32> to vector<2x64xf32>
    %239 = vector.extract_strided_slice %235 {offsets = [0, 192], sizes = [2, 64], strides = [1, 1]} : vector<2x256xf32> to vector<2x64xf32>
    %240 = arith.mulf %237, %221 : vector<2x64xf32>
    %241 = arith.mulf %236, %238 : vector<2x64xf32>
    %242 = arith.addf %240, %241 : vector<2x64xf32>
    %243 = math.tanh %242 : vector<2x64xf32>
    %244 = arith.mulf %239, %243 : vector<2x64xf32>
    %c16_91 = arith.constant 16 : index
    %c0_92 = arith.constant 0 : index
    %245 = vector.load %arg15[%c16_91, %c0_92] : memref<32x256xf32, #tpu.memory_space<vmem>>, vector<2x256xf32>
    %246 = arith.truncf %244 : vector<2x64xf32> to vector<2x64xbf16>
    %cst_93 = arith.constant dense<0.000000e+00> : vector<2x256xf32>
    %247 = tpu.matmul %246, %62, %cst_93 {dimension_numbers = #tpu.dot_dimension_numbers<[1], [0], [0], [1], [0, 0, 1, 1], [], []>} : vector<2x64xbf16>, vector<64x256xbf16>, vector<2x256xf32> -> vector<2x256xf32>
    %248 = arith.addf %245, %247 : vector<2x256xf32>
    %249 = arith.mulf %248, %71 : vector<2x256xf32>
    %250 = arith.negf %249 : vector<2x256xf32>
    %251 = math.exp %250 : vector<2x256xf32>
    %cst_94 = arith.constant 1.000000e+00 : f32
    %252 = vector.broadcast %cst_94 : f32 to vector<2x256xf32>
    %253 = arith.addf %252, %251 : vector<2x256xf32>
    %254 = arith.divf %252, %253 : vector<2x256xf32>
    %255 = arith.mulf %254, %71 : vector<2x256xf32>
    %256 = arith.subf %255, %74 : vector<2x256xf32>
    %257 = vector.extract_strided_slice %256 {offsets = [0, 0], sizes = [2, 64], strides = [1, 1]} : vector<2x256xf32> to vector<2x64xf32>
    %258 = vector.extract_strided_slice %256 {offsets = [0, 64], sizes = [2, 64], strides = [1, 1]} : vector<2x256xf32> to vector<2x64xf32>
    %259 = vector.extract_strided_slice %256 {offsets = [0, 128], sizes = [2, 64], strides = [1, 1]} : vector<2x256xf32> to vector<2x64xf32>
    %260 = vector.extract_strided_slice %256 {offsets = [0, 192], sizes = [2, 64], strides = [1, 1]} : vector<2x256xf32> to vector<2x64xf32>
    %261 = arith.mulf %258, %242 : vector<2x64xf32>
    %262 = arith.mulf %257, %259 : vector<2x64xf32>
    %263 = arith.addf %261, %262 : vector<2x64xf32>
    %264 = math.tanh %263 : vector<2x64xf32>
    %265 = arith.mulf %260, %264 : vector<2x64xf32>
    %c18 = arith.constant 18 : index
    %c0_95 = arith.constant 0 : index
    %266 = vector.load %arg15[%c18, %c0_95] : memref<32x256xf32, #tpu.memory_space<vmem>>, vector<2x256xf32>
    %267 = arith.truncf %265 : vector<2x64xf32> to vector<2x64xbf16>
    %cst_96 = arith.constant dense<0.000000e+00> : vector<2x256xf32>
    %268 = tpu.matmul %267, %62, %cst_96 {dimension_numbers = #tpu.dot_dimension_numbers<[1], [0], [0], [1], [0, 0, 1, 1], [], []>} : vector<2x64xbf16>, vector<64x256xbf16>, vector<2x256xf32> -> vector<2x256xf32>
    %269 = arith.addf %266, %268 : vector<2x256xf32>
    %270 = arith.mulf %269, %71 : vector<2x256xf32>
    %271 = arith.negf %270 : vector<2x256xf32>
    %272 = math.exp %271 : vector<2x256xf32>
    %cst_97 = arith.constant 1.000000e+00 : f32
    %273 = vector.broadcast %cst_97 : f32 to vector<2x256xf32>
    %274 = arith.addf %273, %272 : vector<2x256xf32>
    %275 = arith.divf %273, %274 : vector<2x256xf32>
    %276 = arith.mulf %275, %71 : vector<2x256xf32>
    %277 = arith.subf %276, %74 : vector<2x256xf32>
    %278 = vector.extract_strided_slice %277 {offsets = [0, 0], sizes = [2, 64], strides = [1, 1]} : vector<2x256xf32> to vector<2x64xf32>
    %279 = vector.extract_strided_slice %277 {offsets = [0, 64], sizes = [2, 64], strides = [1, 1]} : vector<2x256xf32> to vector<2x64xf32>
    %280 = vector.extract_strided_slice %277 {offsets = [0, 128], sizes = [2, 64], strides = [1, 1]} : vector<2x256xf32> to vector<2x64xf32>
    %281 = vector.extract_strided_slice %277 {offsets = [0, 192], sizes = [2, 64], strides = [1, 1]} : vector<2x256xf32> to vector<2x64xf32>
    %282 = arith.mulf %279, %263 : vector<2x64xf32>
    %283 = arith.mulf %278, %280 : vector<2x64xf32>
    %284 = arith.addf %282, %283 : vector<2x64xf32>
    %285 = math.tanh %284 : vector<2x64xf32>
    %286 = arith.mulf %281, %285 : vector<2x64xf32>
    %c20 = arith.constant 20 : index
    %c0_98 = arith.constant 0 : index
    %287 = vector.load %arg15[%c20, %c0_98] : memref<32x256xf32, #tpu.memory_space<vmem>>, vector<2x256xf32>
    %288 = arith.truncf %286 : vector<2x64xf32> to vector<2x64xbf16>
    %cst_99 = arith.constant dense<0.000000e+00> : vector<2x256xf32>
    %289 = tpu.matmul %288, %62, %cst_99 {dimension_numbers = #tpu.dot_dimension_numbers<[1], [0], [0], [1], [0, 0, 1, 1], [], []>} : vector<2x64xbf16>, vector<64x256xbf16>, vector<2x256xf32> -> vector<2x256xf32>
    %290 = arith.addf %287, %289 : vector<2x256xf32>
    %291 = arith.mulf %290, %71 : vector<2x256xf32>
    %292 = arith.negf %291 : vector<2x256xf32>
    %293 = math.exp %292 : vector<2x256xf32>
    %cst_100 = arith.constant 1.000000e+00 : f32
    %294 = vector.broadcast %cst_100 : f32 to vector<2x256xf32>
    %295 = arith.addf %294, %293 : vector<2x256xf32>
    %296 = arith.divf %294, %295 : vector<2x256xf32>
    %297 = arith.mulf %296, %71 : vector<2x256xf32>
    %298 = arith.subf %297, %74 : vector<2x256xf32>
    %299 = vector.extract_strided_slice %298 {offsets = [0, 0], sizes = [2, 64], strides = [1, 1]} : vector<2x256xf32> to vector<2x64xf32>
    %300 = vector.extract_strided_slice %298 {offsets = [0, 64], sizes = [2, 64], strides = [1, 1]} : vector<2x256xf32> to vector<2x64xf32>
    %301 = vector.extract_strided_slice %298 {offsets = [0, 128], sizes = [2, 64], strides = [1, 1]} : vector<2x256xf32> to vector<2x64xf32>
    %302 = vector.extract_strided_slice %298 {offsets = [0, 192], sizes = [2, 64], strides = [1, 1]} : vector<2x256xf32> to vector<2x64xf32>
    %303 = arith.mulf %300, %284 : vector<2x64xf32>
    %304 = arith.mulf %299, %301 : vector<2x64xf32>
    %305 = arith.addf %303, %304 : vector<2x64xf32>
    %306 = math.tanh %305 : vector<2x64xf32>
    %307 = arith.mulf %302, %306 : vector<2x64xf32>
    %c22 = arith.constant 22 : index
    %c0_101 = arith.constant 0 : index
    %308 = vector.load %arg15[%c22, %c0_101] : memref<32x256xf32, #tpu.memory_space<vmem>>, vector<2x256xf32>
    %309 = arith.truncf %307 : vector<2x64xf32> to vector<2x64xbf16>
    %cst_102 = arith.constant dense<0.000000e+00> : vector<2x256xf32>
    %310 = tpu.matmul %309, %62, %cst_102 {dimension_numbers = #tpu.dot_dimension_numbers<[1], [0], [0], [1], [0, 0, 1, 1], [], []>} : vector<2x64xbf16>, vector<64x256xbf16>, vector<2x256xf32> -> vector<2x256xf32>
    %311 = arith.addf %308, %310 : vector<2x256xf32>
    %312 = arith.mulf %311, %71 : vector<2x256xf32>
    %313 = arith.negf %312 : vector<2x256xf32>
    %314 = math.exp %313 : vector<2x256xf32>
    %cst_103 = arith.constant 1.000000e+00 : f32
    %315 = vector.broadcast %cst_103 : f32 to vector<2x256xf32>
    %316 = arith.addf %315, %314 : vector<2x256xf32>
    %317 = arith.divf %315, %316 : vector<2x256xf32>
    %318 = arith.mulf %317, %71 : vector<2x256xf32>
    %319 = arith.subf %318, %74 : vector<2x256xf32>
    %320 = vector.extract_strided_slice %319 {offsets = [0, 0], sizes = [2, 64], strides = [1, 1]} : vector<2x256xf32> to vector<2x64xf32>
    %321 = vector.extract_strided_slice %319 {offsets = [0, 64], sizes = [2, 64], strides = [1, 1]} : vector<2x256xf32> to vector<2x64xf32>
    %322 = vector.extract_strided_slice %319 {offsets = [0, 128], sizes = [2, 64], strides = [1, 1]} : vector<2x256xf32> to vector<2x64xf32>
    %323 = vector.extract_strided_slice %319 {offsets = [0, 192], sizes = [2, 64], strides = [1, 1]} : vector<2x256xf32> to vector<2x64xf32>
    %324 = arith.mulf %321, %305 : vector<2x64xf32>
    %325 = arith.mulf %320, %322 : vector<2x64xf32>
    %326 = arith.addf %324, %325 : vector<2x64xf32>
    %327 = math.tanh %326 : vector<2x64xf32>
    %328 = arith.mulf %323, %327 : vector<2x64xf32>
    %c24 = arith.constant 24 : index
    %c0_104 = arith.constant 0 : index
    %329 = vector.load %arg15[%c24, %c0_104] : memref<32x256xf32, #tpu.memory_space<vmem>>, vector<2x256xf32>
    %330 = arith.truncf %328 : vector<2x64xf32> to vector<2x64xbf16>
    %cst_105 = arith.constant dense<0.000000e+00> : vector<2x256xf32>
    %331 = tpu.matmul %330, %62, %cst_105 {dimension_numbers = #tpu.dot_dimension_numbers<[1], [0], [0], [1], [0, 0, 1, 1], [], []>} : vector<2x64xbf16>, vector<64x256xbf16>, vector<2x256xf32> -> vector<2x256xf32>
    %332 = arith.addf %329, %331 : vector<2x256xf32>
    %333 = arith.mulf %332, %71 : vector<2x256xf32>
    %334 = arith.negf %333 : vector<2x256xf32>
    %335 = math.exp %334 : vector<2x256xf32>
    %cst_106 = arith.constant 1.000000e+00 : f32
    %336 = vector.broadcast %cst_106 : f32 to vector<2x256xf32>
    %337 = arith.addf %336, %335 : vector<2x256xf32>
    %338 = arith.divf %336, %337 : vector<2x256xf32>
    %339 = arith.mulf %338, %71 : vector<2x256xf32>
    %340 = arith.subf %339, %74 : vector<2x256xf32>
    %341 = vector.extract_strided_slice %340 {offsets = [0, 0], sizes = [2, 64], strides = [1, 1]} : vector<2x256xf32> to vector<2x64xf32>
    %342 = vector.extract_strided_slice %340 {offsets = [0, 64], sizes = [2, 64], strides = [1, 1]} : vector<2x256xf32> to vector<2x64xf32>
    %343 = vector.extract_strided_slice %340 {offsets = [0, 128], sizes = [2, 64], strides = [1, 1]} : vector<2x256xf32> to vector<2x64xf32>
    %344 = vector.extract_strided_slice %340 {offsets = [0, 192], sizes = [2, 64], strides = [1, 1]} : vector<2x256xf32> to vector<2x64xf32>
    %345 = arith.mulf %342, %326 : vector<2x64xf32>
    %346 = arith.mulf %341, %343 : vector<2x64xf32>
    %347 = arith.addf %345, %346 : vector<2x64xf32>
    %348 = math.tanh %347 : vector<2x64xf32>
    %349 = arith.mulf %344, %348 : vector<2x64xf32>
    %c26 = arith.constant 26 : index
    %c0_107 = arith.constant 0 : index
    %350 = vector.load %arg15[%c26, %c0_107] : memref<32x256xf32, #tpu.memory_space<vmem>>, vector<2x256xf32>
    %351 = arith.truncf %349 : vector<2x64xf32> to vector<2x64xbf16>
    %cst_108 = arith.constant dense<0.000000e+00> : vector<2x256xf32>
    %352 = tpu.matmul %351, %62, %cst_108 {dimension_numbers = #tpu.dot_dimension_numbers<[1], [0], [0], [1], [0, 0, 1, 1], [], []>} : vector<2x64xbf16>, vector<64x256xbf16>, vector<2x256xf32> -> vector<2x256xf32>
    %353 = arith.addf %350, %352 : vector<2x256xf32>
    %354 = arith.mulf %353, %71 : vector<2x256xf32>
    %355 = arith.negf %354 : vector<2x256xf32>
    %356 = math.exp %355 : vector<2x256xf32>
    %cst_109 = arith.constant 1.000000e+00 : f32
    %357 = vector.broadcast %cst_109 : f32 to vector<2x256xf32>
    %358 = arith.addf %357, %356 : vector<2x256xf32>
    %359 = arith.divf %357, %358 : vector<2x256xf32>
    %360 = arith.mulf %359, %71 : vector<2x256xf32>
    %361 = arith.subf %360, %74 : vector<2x256xf32>
    %362 = vector.extract_strided_slice %361 {offsets = [0, 0], sizes = [2, 64], strides = [1, 1]} : vector<2x256xf32> to vector<2x64xf32>
    %363 = vector.extract_strided_slice %361 {offsets = [0, 64], sizes = [2, 64], strides = [1, 1]} : vector<2x256xf32> to vector<2x64xf32>
    %364 = vector.extract_strided_slice %361 {offsets = [0, 128], sizes = [2, 64], strides = [1, 1]} : vector<2x256xf32> to vector<2x64xf32>
    %365 = vector.extract_strided_slice %361 {offsets = [0, 192], sizes = [2, 64], strides = [1, 1]} : vector<2x256xf32> to vector<2x64xf32>
    %366 = arith.mulf %363, %347 : vector<2x64xf32>
    %367 = arith.mulf %362, %364 : vector<2x64xf32>
    %368 = arith.addf %366, %367 : vector<2x64xf32>
    %369 = math.tanh %368 : vector<2x64xf32>
    %370 = arith.mulf %365, %369 : vector<2x64xf32>
    %c28 = arith.constant 28 : index
    %c0_110 = arith.constant 0 : index
    %371 = vector.load %arg15[%c28, %c0_110] : memref<32x256xf32, #tpu.memory_space<vmem>>, vector<2x256xf32>
    %372 = arith.truncf %370 : vector<2x64xf32> to vector<2x64xbf16>
    %cst_111 = arith.constant dense<0.000000e+00> : vector<2x256xf32>
    %373 = tpu.matmul %372, %62, %cst_111 {dimension_numbers = #tpu.dot_dimension_numbers<[1], [0], [0], [1], [0, 0, 1, 1], [], []>} : vector<2x64xbf16>, vector<64x256xbf16>, vector<2x256xf32> -> vector<2x256xf32>
    %374 = arith.addf %371, %373 : vector<2x256xf32>
    %375 = arith.mulf %374, %71 : vector<2x256xf32>
    %376 = arith.negf %375 : vector<2x256xf32>
    %377 = math.exp %376 : vector<2x256xf32>
    %cst_112 = arith.constant 1.000000e+00 : f32
    %378 = vector.broadcast %cst_112 : f32 to vector<2x256xf32>
    %379 = arith.addf %378, %377 : vector<2x256xf32>
    %380 = arith.divf %378, %379 : vector<2x256xf32>
    %381 = arith.mulf %380, %71 : vector<2x256xf32>
    %382 = arith.subf %381, %74 : vector<2x256xf32>
    %383 = vector.extract_strided_slice %382 {offsets = [0, 0], sizes = [2, 64], strides = [1, 1]} : vector<2x256xf32> to vector<2x64xf32>
    %384 = vector.extract_strided_slice %382 {offsets = [0, 64], sizes = [2, 64], strides = [1, 1]} : vector<2x256xf32> to vector<2x64xf32>
    %385 = vector.extract_strided_slice %382 {offsets = [0, 128], sizes = [2, 64], strides = [1, 1]} : vector<2x256xf32> to vector<2x64xf32>
    %386 = vector.extract_strided_slice %382 {offsets = [0, 192], sizes = [2, 64], strides = [1, 1]} : vector<2x256xf32> to vector<2x64xf32>
    %387 = arith.mulf %384, %368 : vector<2x64xf32>
    %388 = arith.mulf %383, %385 : vector<2x64xf32>
    %389 = arith.addf %387, %388 : vector<2x64xf32>
    %390 = math.tanh %389 : vector<2x64xf32>
    %391 = arith.mulf %386, %390 : vector<2x64xf32>
    %c30 = arith.constant 30 : index
    %c0_113 = arith.constant 0 : index
    %392 = vector.load %arg15[%c30, %c0_113] : memref<32x256xf32, #tpu.memory_space<vmem>>, vector<2x256xf32>
    %393 = arith.truncf %391 : vector<2x64xf32> to vector<2x64xbf16>
    %cst_114 = arith.constant dense<0.000000e+00> : vector<2x256xf32>
    %394 = tpu.matmul %393, %62, %cst_114 {dimension_numbers = #tpu.dot_dimension_numbers<[1], [0], [0], [1], [0, 0, 1, 1], [], []>} : vector<2x64xbf16>, vector<64x256xbf16>, vector<2x256xf32> -> vector<2x256xf32>
    %395 = arith.addf %392, %394 : vector<2x256xf32>
    %396 = arith.mulf %395, %71 : vector<2x256xf32>
    %397 = arith.negf %396 : vector<2x256xf32>
    %398 = math.exp %397 : vector<2x256xf32>
    %cst_115 = arith.constant 1.000000e+00 : f32
    %399 = vector.broadcast %cst_115 : f32 to vector<2x256xf32>
    %400 = arith.addf %399, %398 : vector<2x256xf32>
    %401 = arith.divf %399, %400 : vector<2x256xf32>
    %402 = arith.mulf %401, %71 : vector<2x256xf32>
    %403 = arith.subf %402, %74 : vector<2x256xf32>
    %404 = vector.extract_strided_slice %403 {offsets = [0, 0], sizes = [2, 64], strides = [1, 1]} : vector<2x256xf32> to vector<2x64xf32>
    %405 = vector.extract_strided_slice %403 {offsets = [0, 64], sizes = [2, 64], strides = [1, 1]} : vector<2x256xf32> to vector<2x64xf32>
    %406 = vector.extract_strided_slice %403 {offsets = [0, 128], sizes = [2, 64], strides = [1, 1]} : vector<2x256xf32> to vector<2x64xf32>
    %407 = vector.extract_strided_slice %403 {offsets = [0, 192], sizes = [2, 64], strides = [1, 1]} : vector<2x256xf32> to vector<2x64xf32>
    %408 = arith.mulf %405, %389 : vector<2x64xf32>
    %409 = arith.mulf %404, %406 : vector<2x64xf32>
    %410 = arith.addf %408, %409 : vector<2x64xf32>
    %411 = math.tanh %410 : vector<2x64xf32>
    %412 = arith.mulf %407, %411 : vector<2x64xf32>
    %413 = arith.truncf %412 : vector<2x64xf32> to vector<2x64xbf16>
    %c0_116 = arith.constant 0 : index
    %c0_117 = arith.constant 0 : index
    %414 = vector.load %arg9[%c0_116, %c0_117] : memref<64x3xbf16, #tpu.memory_space<vmem>>, vector<64x3xbf16>
    %cst_118 = arith.constant dense<0.000000e+00> : vector<2x3xf32>
    %415 = tpu.matmul %413, %414, %cst_118 {dimension_numbers = #tpu.dot_dimension_numbers<[1], [0], [0], [1], [0, 0, 1, 1], [], []>} : vector<2x64xbf16>, vector<64x3xbf16>, vector<2x3xf32> -> vector<2x3xf32>
    %c0_119 = arith.constant 0 : index
    %c0_120 = arith.constant 0 : index
    %416 = vector.load %arg10[%c0_119, %c0_120] : memref<1x3xf32, #tpu.memory_space<vmem>>, vector<1x3xf32>
    %417 = vector.broadcast %416 : vector<1x3xf32> to vector<2x3xf32>
    %418 = arith.addf %415, %417 : vector<2x3xf32>
    %c0_121 = arith.constant 0 : index
    %c0_122 = arith.constant 0 : index
    %419 = vector.load %arg11[%c0_121, %c0_122] : memref<2x3xf32, #tpu.memory_space<vmem>>, vector<2x3xf32>
    tpu.vector_store %arg11[%c0_121, %c0_122], %418 {strides = array<i32>} : memref<2x3xf32, #tpu.memory_space<vmem>>, vector<2x3xf32>,
    return
  }
}

</mosaic_0001>

<bundles_post_ra>
// kernel: conv_lstm_forward.1
= control target key start
LH: loop header
LB: loop body
LE: loop exit
PB: predicated region body
PF: predicated region fallthrough
CT: control target
= control target key end

     0   :  { %vm135_vm0 = vcmask 1046528   ;;  %vm136_vm1 = vcmask 1047552   ;;  %v2941_v1 = vmov 65535   ;;  %vm110_vm2 = vcmask 121856   ;;  %s2943_s15 = smov 16   ;;  %s2944_s16 = smov 32   ;;  %s3604_s0 = inlined_call_operand.vmem [shape: bf16[128,15], index: 0, kind: input, shape index: {}]   ;;  %s3605_s1 = inlined_call_operand.vmem [shape: bf16[15,16], index: 1, kind: input, shape index: {}]   ;;  %s3606_s2 = inlined_call_operand.vmem [shape: f32[1,16], index: 2, kind: input, shape index: {}]   ;;  %s3607_s3 = inlined_call_operand.vmem [shape: bf16[96,64], index: 3, kind: input, shape index: {}]   ;;  %s3608_s4 = inlined_call_operand.vmem [shape: f32[1,64], index: 4, kind: input, shape index: {}]   ;;  %s3609_s5 = inlined_call_operand.vmem [shape: bf16[32,64], index: 5, kind: input, shape index: {}]   ;;  %s3610_s6 = inlined_call_operand.vmem [shape: bf16[32,256], index: 6, kind: input, shape index: {}]   ;;  %s3611_s7 = inlined_call_operand.vmem [shape: bf16[64,256], index: 7, kind: input, shape index: {}]   ;;  %s3612_s8 = inlined_call_operand.vmem [shape: f32[1,256], index: 8, kind: input, shape index: {}]   ;;  %s3613_s9 = inlined_call_operand.vmem [shape: bf16[64,3], index: 9, kind: input, shape index: {}]   ;;  %s3614_s10 = inlined_call_operand.vmem [shape: f32[1,3], index: 10, kind: input, shape index: {}]   ;;  %s3615_s11 = inlined_call_operand.hbm [shape: f32[2,3], index: 11, kind: output, shape index: {}]  }
   0x1   :  { %v2712_v0 = vld [vmem:[%s3605_s1] sm:$0xff]   ;;  %v137_v2 = vsel %vm135_vm0, 4294967295, %v2941_v1  ;;  %v2715_v7 = vld [vmem:[%s3604_s0 + $0x8] sm:$0xff]   ;;  %vm263_vm3 = vcmask 130048   ;;  %v2717_v9 = vld [vmem:[%s3604_s0 + $0x10] sm:$0xff]   ;;  %v2942_v11 = vmov 0.0  }
   0x2   :  { %v2713_v3 = vld [vmem:[%s3604_s0] sm:$0xff]   ;;  %v138_v5 = vsel %vm136_vm1, %v137_v2, 0  ;;  %v2716_v8 = vld [vmem:[%s3604_s0 + $0x28] sm:$0xff]   ;;  %v2718_v10 = vld [vmem:[%s3604_s0 + $0x30] sm:$0xff]   ;;  %275 = vst.msk [vmem:[#allocation3 + $0x18] sm:$0xff] %vm263_vm3, %v2942_v11 }
   0x3   :  { %v2714_v4 = vld [vmem:[%s3604_s0 + $0x20] sm:$0xff]   ;;  %v140_v6 = vand.u32 %v2712_v0, %v138_v5  ;;  %2618 = vmatprep.mubr.msk.bf16.mxu0 %vm110_vm2, %v2713_v3  ;;  %264 = vst.msk [vmem:[#allocation2] sm:$0xff] %vm263_vm3, %v2942_v11  ;;  %265 = vst.msk [vmem:[#allocation2 + $0x8] sm:$0xff] %vm263_vm3, %v2942_v11  ;;  %v2719_v12 = vld [vmem:[%s3604_s0 + $0x18] sm:$0xff]  }
   0x4   :  { %2626 = vmatprep.mubr.msk.bf16.mxu1 %vm110_vm2, %v2714_v4  ;;  %266 = vst.msk [vmem:[#allocation2 + $0x10] sm:$0xff] %vm263_vm3, %v2942_v11  ;;  %267 = vst.msk [vmem:[#allocation2 + $0x18] sm:$0xff] %vm263_vm3, %v2942_v11  ;;  %v2720_v13 = vld [vmem:[%s3604_s0 + $0x38] sm:$0xff]  }
   0x5   :  { %2616 = vmatprep.subr.bf16.mxu0 %v140_v6  ;;  %2678 = vmatprep.subr.bf16.mxu1 %v140_v6  ;;  %268 = vst.msk [vmem:[#allocation2 + $0x20] sm:$0xff] %vm263_vm3, %v2942_v11  ;;  %269 = vst.msk [vmem:[#allocation2 + $0x28] sm:$0xff] %vm263_vm3, %v2942_v11 }
   0x6   :  { %2617 = vmatpush3.bf16.msra.mxu0 %v140_v6  ;;  %2679 = vmatpush3.bf16.msra.mxu1 %v140_v6  ;;  %270 = vst.msk [vmem:[#allocation2 + $0x30] sm:$0xff] %vm263_vm3, %v2942_v11  ;;  %271 = vst.msk [vmem:[#allocation2 + $0x38] sm:$0xff] %vm263_vm3, %v2942_v11 }
   0x7   :  { %272 = vst.msk [vmem:[#allocation3] sm:$0xff] %vm263_vm3, %v2942_v11  ;;  %273 = vst.msk [vmem:[#allocation3 + $0x8] sm:$0xff] %vm263_vm3, %v2942_v11 }
   0x8   :  { %274 = vst.msk [vmem:[#allocation3 + $0x10] sm:$0xff] %vm263_vm3, %v2942_v11  ;;  %276 = vst.msk [vmem:[#allocation3 + $0x20] sm:$0xff] %vm263_vm3, %v2942_v11 }
   0x9   :  { %277 = vst.msk [vmem:[#allocation3 + $0x28] sm:$0xff] %vm263_vm3, %v2942_v11  ;;  %278 = vst.msk [vmem:[#allocation3 + $0x30] sm:$0xff] %vm263_vm3, %v2942_v11  ;;  %2619 = vmatmul.mubr.msk.bf16.vlgmr.msra.gmra.mxu0 %vm110_vm2, %v2715_v7  ;;  %2627 = vmatmul.mubr.msk.bf16.vlgmr.msra.gmra.mxu1 %vm110_vm2, %v2716_v8  ;;  %v317_v14 = vld [vmem:[#allocation3 + $0x18] sm:$0xff] }
   0xa   :  { %279 = vst.msk [vmem:[#allocation3 + $0x38] sm:$0xff] %vm263_vm3, %v2942_v11  ;;  %2622 = vmatprep.mubr.msk.bf16.mxu0 %vm110_vm2, %v2717_v9  ;;  %2630 = vmatprep.mubr.msk.bf16.mxu1 %vm110_vm2, %v2718_v10 }
   0xb   :  { %336 = vrot.lane.b32.xlu1 %v317_v14, %s2943_s15  ;;  %v367_v16 = vld [vmem:[#allocation2 + $0x18] sm:$0xff] }
   0xe   :  { %v314_v15 = vld [vmem:[#allocation3] sm:$0xff] }
   0xf   :  { %330 = vrot.lane.b32.xlu0 %v314_v15, %s2943_s15  ;;  %386 = vrot.lane.b32.xlu1 %v367_v16, %s2944_s16 }
  0x11   :  { %2623 = vmatmul.mubr.msk.bf16.gmra.mxu0 %vm110_vm2, %v2719_v12  ;;  %2631 = vmatmul.mubr.msk.bf16.gmra.mxu1 %vm110_vm2, %v2720_v13 }
  0x12   :  { %16 = vsyncpa [#allocation7], 0  ;;  %s2945_s17 = smov 48   ;;  %v465_v17 = vld [vmem:[#allocation2 + $0x19] sm:$0xff]  ;;  %s2946_s0 = smov 64   ;;  %vm288_vm4 = vcmask 785408  }
  0x13   :  { %435 = vrot.lane.b32.xlu1 %v317_v14, %s2945_s17  ;;  %v364_v18 = vld [vmem:[#allocation2] sm:$0xff]  ;;  %s2947_s18 = smov 80   ;;  %v321_v20 = vld [vmem:[#allocation3 + $0x38] sm:$0x7f]  ;;  %292 = vst.msk [vmem:[#allocation4 + $0x18] sm:$0xff] %vm288_vm4, %v2942_v11  ;;  %293 = vst.msk [vmem:[#allocation4 + $0x20] sm:$0xff] %vm288_vm4, %v2942_v11 }
  0x14   :  { %380 = vrot.lane.b32.xlu0 %v364_v18, %s2944_s16  ;;  %v515_v19 = vld [vmem:[#allocation3 + $0x19] sm:$0xff]  ;;  %289 = vst.msk [vmem:[#allocation4] sm:$0xff] %vm288_vm4, %v2942_v11  ;;  %290 = vst.msk [vmem:[#allocation4 + $0x8] sm:$0xff] %vm288_vm4, %v2942_v11  ;;  %vm354_vm5 = vcmask 261248   ;;  %vm312_vm6 = vcmask 129024   ;;  %vm404_vm7 = vcmask 392448  }
  0x15   :  { %v318_v21 = vld [vmem:[#allocation3 + $0x20] sm:$0xff]  ;;  %v371_v22 = vld [vmem:[#allocation2 + $0x38] sm:$0xff]  ;;  %291 = vst.msk [vmem:[#allocation4 + $0x10] sm:$0xff] %vm288_vm4, %v2942_v11  ;;  %294 = vst.msk [vmem:[#allocation4 + $0x28] sm:$0xff] %vm288_vm4, %v2942_v11  ;;  %vm453_vm8 = vcmask 523648   ;;  %vm362_vm9 = vcmask 260224  }
  0x16   :  { %v368_v23 = vld [vmem:[#allocation2 + $0x20] sm:$0xff]  ;;  %v420_v24 = vld [vmem:[#allocation3 + $0x38] sm:$0xff]  ;;  %295 = vst.msk [vmem:[#allocation4 + $0x30] sm:$0xff] %vm288_vm4, %v2942_v11  ;;  %296 = vst.msk [vmem:[#allocation4 + $0x38] sm:$0xff] %vm288_vm4, %v2942_v11  ;;  %vm502_vm10 = vcmask 654848   ;;  %vm552_vm11 = vcmask 786048  }
  0x17   :  { %484 = vrot.lane.b32.xlu1 %v465_v17, %s2946_s0  ;;  %308 = vst.msk [vmem:[#allocation4 + $0x19] sm:$0xff] %vm263_vm3, %v367_v16  ;;  %305 = vst.msk [vmem:[#allocation4 + $0x1] sm:$0xff] %vm263_vm3, %v364_v18  ;;  %v304_v27 = vld [vmem:[#allocation2 + $0x38] sm:$0x7f]  ;;  %v2486_v40 = vld [vmem:[%s3606_s2] ss:$0 sm:$0xff] }
  0x18   :  { %429 = vrot.lane.b32.xlu0 %v314_v15, %s2945_s17  ;;  %309 = vst.msk [vmem:[#allocation4 + $0x21] sm:$0xff] %vm263_vm3, %v368_v23  ;;  %vm510_vm12 = vcmask 653824   ;;  %vm560_vm13 = vcmask 785024   ;;  %s2948_s13 = smov 96   ;;  %vm772_vm14 = vcmask 523264   ;;  %vm866_vm15 = vcmask 261120  }
  0x19   :  { %313 = vst.msk [vmem:[#allocation4 + $0x39] sm:$0x7f] %vm312_vm6, %v304_v27  ;;  %vm2951_vm1 = vmmov 0   ;;  %vm2470_vm2 = vcmask 17408  }
  0x1b   :  { %534 = vrot.lane.b32.xlu1 %v515_v19, %s2947_s18 }
  0x1c   :  { %338 = vrot.lane.b32.xlu0 %v318_v21, %s2943_s15 }
  0x1f   :  { %344 = vrot.lane.b32.xlu1 %v321_v20, %s2943_s15 }
  0x20   :  { %388 = vrot.lane.b32.xlu0 %v368_v23, %s2944_s16 }
  0x23   :  { %394 = vrot.lane.b32.xlu1 %v371_v22, %s2944_s16 }
  0x24   :  { %437 = vrot.lane.b32.xlu0 %v318_v21, %s2945_s17 }
  0x27   :  { %443 = vrot.lane.b32.xlu1 %v420_v24, %s2945_s17 }
  0x7d   :  { %v337_v25 = vpop.permute.xlu1 %336 }
  0x7e   :  { %358 = vst.msk [vmem:[#allocation4 + $0x19] sm:$0xff] %vm354_vm5, %v337_v25 }
  0x81   :  { %v331_v26 = vpop.permute.xlu0 %330  ;;  %v3115_v28 = vpop.permute.xlu1 %386 }
  0x82   :  { %355 = vst.msk [vmem:[#allocation4 + $0x1] sm:$0xff] %vm354_vm5, %v331_v26 }
  0x85   :  { %v3117_v29 = vpop.permute.xlu1 %435 }
  0x86   :  { %v381_v31 = vpop.permute.xlu0 %380 }
  0x87   :  { %405 = vst.msk [vmem:[#allocation4] sm:$0xff] %vm404_vm7, %v381_v31 }
  0x89   :  { %v3119_v30 = vpop.permute.xlu1 %484 }
  0x8a   :  { %v430_v33 = vpop.permute.xlu0 %429 }
  0x8b   :  { %454 = vst.msk [vmem:[#allocation4] sm:$0xff] %vm453_vm8, %v430_v33 }
  0x8d   :  { %v3122_v32 = vpop.permute.xlu1 %534 }
  0x8e   :  { %v339_v35 = vpop.permute.xlu0 %338 }
  0x8f   :  { %359 = vst.msk [vmem:[#allocation4 + $0x21] sm:$0xff] %vm354_vm5, %v339_v35 }
  0x91   :  { %v345_v34 = vpop.permute.xlu1 %344 }
  0x92   :  { %363 = vst.msk [vmem:[#allocation4 + $0x39] sm:$0x7f] %vm362_vm9, %v345_v34  ;;  %v389_v41 = vpop.permute.xlu0 %388 }
  0x93   :  { %409 = vst.msk [vmem:[#allocation4 + $0x20] sm:$0xff] %vm404_vm7, %v389_v41 }
  0x96   :  { %v438_v50 = vpop.permute.xlu0 %437 }
  0x97   :  { %458 = vst.msk [vmem:[#allocation4 + $0x20] sm:$0xff] %vm453_vm8, %v438_v50  ;;  %v2723_v50 = vld [vmem:[%s3607_s3 + $0x18] sm:$0xff]  }
  0xc9   :  { %v2620_v36 = vpop.f32.mrf.mxu0  ;;  %v2628_v37 = vpop.f32.mrf.mxu1 }
  0xca   :  { %v185_v44 = vadd.f32 %v2620_v36, %v2486_v40  ;;  %v217_v45 = vadd.f32 %v2628_v37, %v2486_v40 }
  0xcb   :  { %v176_v38 = vpop.f32.mrf.mxu0  ;;  %v208_v39 = vpop.f32.mrf.mxu1 }
  0xcc   :  { %v177_v46 = vadd.f32 %v2486_v40, %v176_v38  ;;  %v209_v47 = vadd.f32 %v2486_v40, %v208_v39  ;;  %v241_v55 = vmax.f32 %v185_v44, 0.0  ;;  %v249_v56 = vmax.f32 %v217_v45, 0.0 }
  0xcd   :  { %v2621_v42 = vpop.f32.mrf.mxu0  ;;  %v2629_v43 = vpop.f32.mrf.mxu1 }
  0xce   :  { %v239_v57 = vmax.f32 %v177_v46, 0.0  ;;  %v247_v58 = vmax.f32 %v209_v47, 0.0  ;;  %v188_v1 = vadd.f32 %v2621_v42, %v2486_v40  ;;  %v220_v2 = vadd.f32 %v2629_v43, %v2486_v40  ;;  %v2721_v46 = vld [vmem:[%s3607_s3 + $0x28] sm:$0xff]  }
  0xcf   :  { %v179_v48 = vpop.f32.mrf.mxu0  ;;  %v211_v49 = vpop.f32.mrf.mxu1  ;;  %2634 = vmatprep.subr.bf16.mxu1 %v2721_v46 }
  0xd0   :  { %v180_v3 = vadd.f32 %v2486_v40, %v179_v48  ;;  %v212_v4 = vadd.f32 %v2486_v40, %v211_v49  ;;  %v242_v20 = vmax.f32 %v188_v1, 0.0  ;;  %v250_v21 = vmax.f32 %v220_v2, 0.0  ;;  %2635 = vmatpush3.bf16.msra.mxu1 %v2721_v46  ;;  %v2722_v48 = vld [vmem:[%s3607_s3 + $0x20] sm:$0xff]  }
  0xd1   :  { %v2624_v51 = vpop.f32.mrf.mxu0  ;;  %v2632_v52 = vpop.f32.mrf.mxu1  ;;  %2636 = vmatprep.subr.bf16.mxu1 %v2722_v48 }
  0xd2   :  { %v201_v53 = vadd.f32 %v2624_v51, %v2486_v40  ;;  %v233_v54 = vadd.f32 %v2632_v52, %v2486_v40  ;;  %v240_v24 = vmax.f32 %v180_v3, 0.0  ;;  %v248_v25 = vmax.f32 %v212_v4, 0.0 }
  0xd3   :  { %v192_v59 = vpop.f32.mrf.mxu0  ;;  %v224_v60 = vpop.f32.mrf.mxu1 }
  0xd4   :  { %v245_v61 = vmax.f32 %v201_v53, 0.0  ;;  %v253_v62 = vmax.f32 %v233_v54, 0.0  ;;  %v193_v63 = vadd.f32 %v2486_v40, %v192_v59  ;;  %v225_v0 = vadd.f32 %v2486_v40, %v224_v60  ;;  %2637 = vmatpush3.bf16.msra.mxu1 %v2722_v48  ;;  %v2724_v53 = vld [vmem:[%s3607_s3 + $0x10] sm:$0xff]   ;;  %v519_v60 = vld [vmem:[#allocation3 + $0x39] sm:$0x7f] }
  0xd5   :  { %v2625_v5 = vpop.f32.mrf.mxu0  ;;  %v2633_v6 = vpop.f32.mrf.mxu1  ;;  %2638 = vmatprep.subr.bf16.mxu1 %v2723_v50 }
  0xd6   :  { %v257_v7 = vmax.f32 %v241_v55, %v245_v61  ;;  %v261_v8 = vmax.f32 %v249_v56, %v253_v62  ;;  %v243_v9 = vmax.f32 %v193_v63, 0.0  ;;  %v251_v10 = vmax.f32 %v225_v0, 0.0  ;;  %v2725_v55 = vld [vmem:[%s3607_s3 + $0x8] sm:$0xff]   ;;  %v469_v56 = vld [vmem:[#allocation2 + $0x39] sm:$0x7f]  ;;  %v395_v0 = vpop.permute.xlu1 %394 }
  0xd7   :  { %v204_v12 = vadd.f32 %v2625_v5, %v2486_v40  ;;  %v236_v13 = vadd.f32 %v2633_v6, %v2486_v40  ;;  %v195_v14 = vpop.f32.mrf.mxu0  ;;  %v227_v15 = vpop.f32.mrf.mxu1 }
  0xd8   :  { %284 = vst.msk [vmem:[#allocation2 + $0x28] sm:$0xff] %vm263_vm3, %v257_v7  ;;  %286 = vst.msk [vmem:[#allocation3 + $0x28] sm:$0xff] %vm263_vm3, %v261_v8  ;;  %v255_v16 = vmax.f32 %v239_v57, %v243_v9  ;;  %v259_v17 = vmax.f32 %v247_v58, %v251_v10  ;;  %v196_v18 = vadd.f32 %v2486_v40, %v195_v14  ;;  %2639 = vmatpush3.bf16.msra.mxu1 %v2723_v50  ;;  %v2726_v57 = vld [vmem:[%s3607_s3] sm:$0xff]  }
  0xd9   :  { %v228_v19 = vadd.f32 %v2486_v40, %v227_v15  ;;  %v246_v22 = vmax.f32 %v204_v12, 0.0  ;;  %v254_v23 = vmax.f32 %v236_v13, 0.0  ;;  %2640 = vmatprep.subr.bf16.mxu1 %v2724_v53 }
  0xda   :  { %280 = vst.msk [vmem:[#allocation2 + $0x8] sm:$0xff] %vm263_vm3, %v255_v16  ;;  %282 = vst.msk [vmem:[#allocation3 + $0x8] sm:$0xff] %vm263_vm3, %v259_v17  ;;  %v244_v26 = vmax.f32 %v196_v18, 0.0  ;;  %v444_v1 = vpop.permute.xlu1 %443 }
  0xdb   :  { %v252_v27 = vmax.f32 %v228_v19, 0.0  ;;  %v258_v31 = vmax.f32 %v242_v20, %v246_v22  ;;  %v262_v33 = vmax.f32 %v250_v21, %v254_v23 }
  0xdc   :  { %v256_v34 = vmax.f32 %v240_v24, %v244_v26  ;;  %2641 = vmatpush3.bf16.msra.mxu1 %v2724_v53 }
  0xdd   :  { %v260_v35 = vmax.f32 %v248_v25, %v252_v27  ;;  %285 = vst.msk [vmem:[#allocation2 + $0x30] sm:$0xff] %vm263_vm3, %v258_v31  ;;  %287 = vst.msk [vmem:[#allocation3 + $0x30] sm:$0xff] %vm263_vm3, %v262_v33  ;;  %2642 = vmatprep.subr.bf16.mxu1 %v2725_v55 }
  0xde   :  { %281 = vst.msk [vmem:[#allocation2 + $0x10] sm:$0xff] %vm263_vm3, %v256_v34 }
  0xdf   :  { %283 = vst.msk [vmem:[#allocation3 + $0x10] sm:$0xff] %vm263_vm3, %v260_v35  ;;  %v319_v36 = vld [vmem:[#allocation3 + $0x28] sm:$0xff] }
  0xe0   :  { %v466_v37 = vld [vmem:[#allocation2 + $0x21] sm:$0xff]  ;;  %340 = vrot.lane.b32.xlu1 %v319_v36, %s2943_s15  ;;  %2643 = vmatpush3.bf16.msra.mxu1 %v2725_v55 }
  0xe1   :  { %v369_v38 = vld [vmem:[#allocation2 + $0x28] sm:$0xff]  ;;  %486 = vrot.lane.b32.xlu0 %v466_v37, %s2946_s0  ;;  %2644 = vmatprep.subr.bf16.mxu1 %v2726_v57 }
  0xe2   :  { %310 = vst.msk [vmem:[#allocation4 + $0x29] sm:$0xff] %vm263_vm3, %v369_v38  ;;  %v365_v39 = vld [vmem:[#allocation2 + $0x8] sm:$0xff] }
  0xe3   :  { %v315_v40 = vld [vmem:[#allocation3 + $0x8] sm:$0xff]  ;;  %306 = vst.msk [vmem:[#allocation4 + $0x9] sm:$0xff] %vm263_vm3, %v365_v39 }
  0xe4   :  { %390 = vrot.lane.b32.xlu1 %v369_v38, %s2944_s16  ;;  %v370_v41 = vld [vmem:[#allocation2 + $0x30] sm:$0xff]  ;;  %v462_v43 = vld [vmem:[#allocation2 + $0x1] sm:$0xff]  ;;  %2645 = vmatpush3.bf16.msra.mxu1 %v2726_v57 }
  0xe5   :  { %332 = vrot.lane.b32.xlu0 %v315_v40, %s2943_s15  ;;  %311 = vst.msk [vmem:[#allocation4 + $0x31] sm:$0xff] %vm263_vm3, %v370_v41  ;;  %v366_v42 = vld [vmem:[#allocation2 + $0x10] sm:$0xff]  ;;  %v512_v44 = vld [vmem:[#allocation3 + $0x1] sm:$0xff] }
  0xe6   :  { %307 = vst.msk [vmem:[#allocation4 + $0x11] sm:$0xff] %vm263_vm3, %v366_v42  ;;  %v320_v45 = vld [vmem:[#allocation3 + $0x30] sm:$0xff]  ;;  %v516_v62 = vld [vmem:[#allocation3 + $0x21] sm:$0xff] }
  0xe7   :  { %v467_v47 = vld [vmem:[#allocation2 + $0x29] sm:$0xff]  ;;  %v468_v51 = vld [vmem:[#allocation2 + $0x31] sm:$0xff] }
  0xe8   :  { %439 = vrot.lane.b32.xlu1 %v319_v36, %s2945_s17  ;;  %v316_v49 = vld [vmem:[#allocation3 + $0x10] sm:$0xff] }
  0xe9   :  { %478 = vrot.lane.b32.xlu0 %v462_v43, %s2946_s0  ;;  %v463_v52 = vld [vmem:[#allocation2 + $0x9] sm:$0xff]  ;;  %v464_v58 = vld [vmem:[#allocation2 + $0x11] sm:$0xff] }
  0xea   :  { %v513_v54 = vld [vmem:[#allocation3 + $0x9] sm:$0xff]  ;;  %v514_v61 = vld [vmem:[#allocation3 + $0x11] sm:$0xff] }
  0xeb   :  { %v517_v59 = vld [vmem:[#allocation3 + $0x29] sm:$0xff]  ;;  %v518_v63 = vld [vmem:[#allocation3 + $0x31] sm:$0xff] }
  0xec   :  { %382 = vrot.lane.b32.xlu1 %v365_v39, %s2944_s16 }
  0xed   :  { %528 = vrot.lane.b32.xlu0 %v512_v44, %s2947_s18 }
  0xf0   :  { %431 = vrot.lane.b32.xlu1 %v315_v40, %s2945_s17 }
  0xf1   :  { %342 = vrot.lane.b32.xlu0 %v320_v45, %s2943_s15 }
  0xf4   :  { %488 = vrot.lane.b32.xlu1 %v467_v47, %s2946_s0  ;;  %v2504_v47 = vld [vmem:[%s3608_s4] ss:$0 sm:$0xff] }
  0xf5   :  { %392 = vrot.lane.b32.xlu0 %v370_v41, %s2944_s16 }
  0xf8   :  { %334 = vrot.lane.b32.xlu1 %v316_v49, %s2943_s15 }
  0xf9   :  { %441 = vrot.lane.b32.xlu0 %v320_v45, %s2945_s17 }
  0xfc   :  { %480 = vrot.lane.b32.xlu1 %v463_v52, %s2946_s0 }
  0xfd   :  { %490 = vrot.lane.b32.xlu0 %v468_v51, %s2946_s0 }
 0x100   :  { %530 = vrot.lane.b32.xlu1 %v513_v54, %s2947_s18 }
 0x101   :  { %384 = vrot.lane.b32.xlu0 %v366_v42, %s2944_s16 }
 0x104   :  { %492 = vrot.lane.b32.xlu1 %v469_v56, %s2946_s0 }
 0x105   :  { %433 = vrot.lane.b32.xlu0 %v316_v49, %s2945_s17 }
 0x108   :  { %538 = vrot.lane.b32.xlu1 %v517_v59, %s2947_s18 }
 0x109   :  { %482 = vrot.lane.b32.xlu0 %v464_v58, %s2946_s0 }
 0x10c   :  { %542 = vrot.lane.b32.xlu1 %v519_v60, %s2947_s18 }
 0x10d   :  { %532 = vrot.lane.b32.xlu0 %v514_v61, %s2947_s18 }
 0x111   :  { %536 = vrot.lane.b32.xlu0 %v516_v62, %s2947_s18  ;;  %v2727_v62 = vld [vmem:[%s3609_s5] sm:$0xff]  }
 0x112   :  { %2662 = vmatprep.mubr.msk.bf16.mxu0 %vm772_vm14, %v2727_v62 }
 0x115   :  { %540 = vrot.lane.b32.xlu0 %v518_v63, %s2947_s18  ;;  %v2729_v63 = vld [vmem:[%s3610_s6 + $0x10] ss:$8 sps:$4 sm:$0xff]  }
 0x152   :  { %v341_v2 = vpop.permute.xlu1 %340 }
 0x153   :  { %v487_v3 = vpop.permute.xlu0 %486  ;;  %360 = vst.msk [vmem:[#allocation4 + $0x29] sm:$0xff] %vm354_vm5, %v341_v2 }
 0x154   :  { %507 = vst.msk [vmem:[#allocation4 + $0x20] sm:$0xff] %vm502_vm10, %v487_v3 }
 0x156   :  { %v391_v5 = vpop.permute.xlu1 %390 }
 0x157   :  { %v333_v4 = vpop.permute.xlu0 %332  ;;  %410 = vst.msk [vmem:[#allocation4 + $0x28] sm:$0xff] %vm404_vm7, %v391_v5 }
 0x158   :  { %356 = vst.msk [vmem:[#allocation4 + $0x9] sm:$0xff] %vm354_vm5, %v333_v4 }
 0x15a   :  { %v440_v6 = vpop.permute.xlu1 %439 }
 0x15b   :  { %v479_v7 = vpop.permute.xlu0 %478  ;;  %459 = vst.msk [vmem:[#allocation4 + $0x28] sm:$0xff] %vm453_vm8, %v440_v6 }
 0x15c   :  { %503 = vst.msk [vmem:[#allocation4] sm:$0xff] %vm502_vm10, %v479_v7 }
 0x15e   :  { %v383_v9 = vpop.permute.xlu1 %382 }
 0x15f   :  { %v529_v8 = vpop.permute.xlu0 %528  ;;  %406 = vst.msk [vmem:[#allocation4 + $0x8] sm:$0xff] %vm404_vm7, %v383_v9 }
 0x160   :  { %553 = vst.msk [vmem:[#allocation4] sm:$0xff] %vm552_vm11, %v529_v8 }
 0x162   :  { %v432_v12 = vpop.permute.xlu1 %431 }
 0x163   :  { %v343_v10 = vpop.permute.xlu0 %342  ;;  %455 = vst.msk [vmem:[#allocation4 + $0x8] sm:$0xff] %vm453_vm8, %v432_v12 }
 0x164   :  { %361 = vst.msk [vmem:[#allocation4 + $0x31] sm:$0xff] %vm354_vm5, %v343_v10 }
 0x165   :  { %412 = vst.msk [vmem:[#allocation4 + $0x38] sm:$0xff] %vm404_vm7, %v395_v0  ;;  %v2731_v0 = vld [vmem:[%s3610_s6 + $0x14] ss:$8 sps:$4 sm:$0xff]  }
 0x166   :  { %461 = vst.msk [vmem:[#allocation4 + $0x38] sm:$0xff] %vm453_vm8, %v444_v1  ;;  %v489_v14 = vpop.permute.xlu1 %488  ;;  %885 = vmatprep.subr.bf16.mxu1 %v2731_v0 }
 0x167   :  { %v393_v13 = vpop.permute.xlu0 %392  ;;  %508 = vst.msk [vmem:[#allocation4 + $0x28] sm:$0xff] %vm502_vm10, %v489_v14  ;;  %v562_v22 = vld [vmem:[#allocation4] sm:$0xff] }
 0x168   :  { %411 = vst.msk [vmem:[#allocation4 + $0x30] sm:$0xff] %vm404_vm7, %v393_v13 }
 0x16a   :  { %v335_v16 = vpop.permute.xlu1 %334 }
 0x16b   :  { %v442_v15 = vpop.permute.xlu0 %441  ;;  %357 = vst.msk [vmem:[#allocation4 + $0x11] sm:$0xff] %vm354_vm5, %v335_v16 }
 0x16c   :  { %460 = vst.msk [vmem:[#allocation4 + $0x30] sm:$0xff] %vm453_vm8, %v442_v15 }
 0x16d   :  { %408 = vst.msk [vmem:[#allocation4 + $0x18] sm:$0xff] %vm404_vm7, %v3115_v28 }
 0x16e   :  { %457 = vst.msk [vmem:[#allocation4 + $0x18] sm:$0xff] %vm453_vm8, %v3117_v29  ;;  %v481_v18 = vpop.permute.xlu1 %480 }
 0x16f   :  { %506 = vst.msk [vmem:[#allocation4 + $0x18] sm:$0xff] %vm502_vm10, %v3119_v30  ;;  %v491_v17 = vpop.permute.xlu0 %490  ;;  %504 = vst.msk [vmem:[#allocation4 + $0x8] sm:$0xff] %vm502_vm10, %v481_v18 }
 0x170   :  { %556 = vst.msk [vmem:[#allocation4 + $0x18] sm:$0xff] %vm552_vm11, %v3122_v32 }
 0x171   :  { %509 = vst.msk [vmem:[#allocation4 + $0x30] sm:$0xff] %vm502_vm10, %v491_v17 }
 0x172   :  { %v531_v20 = vpop.permute.xlu1 %530 }
 0x173   :  { %v385_v19 = vpop.permute.xlu0 %384  ;;  %554 = vst.msk [vmem:[#allocation4 + $0x8] sm:$0xff] %vm552_vm11, %v531_v20 }
 0x174   :  { %407 = vst.msk [vmem:[#allocation4 + $0x10] sm:$0xff] %vm404_vm7, %v385_v19 }
 0x176   :  { %v493_v29 = vpop.permute.xlu1 %492 }
 0x177   :  { %v434_v28 = vpop.permute.xlu0 %433  ;;  %511 = vst.msk [vmem:[#allocation4 + $0x38] sm:$0x7f] %vm510_vm12, %v493_v29  ;;  %v565_v33 = vld [vmem:[#allocation4 + $0x18] sm:$0xff] }
 0x178   :  { %456 = vst.msk [vmem:[#allocation4 + $0x10] sm:$0xff] %vm453_vm8, %v434_v28 }
 0x17a   :  { %v539_v21 = vpop.permute.xlu1 %538  ;;  %v563_v32 = vld [vmem:[#allocation4 + $0x8] sm:$0xff] }
 0x17b   :  { %v483_v30 = vpop.permute.xlu0 %482  ;;  %558 = vst.msk [vmem:[#allocation4 + $0x28] sm:$0xff] %vm552_vm11, %v539_v21  ;;  %v570_v23 = vpack.c.bf16 %v563_v32, %v562_v22 }
 0x17c   :  { %505 = vst.msk [vmem:[#allocation4 + $0x10] sm:$0xff] %vm502_vm10, %v483_v30 }
 0x17d   :  { %2646 = vmatprep.mubr.msk.bf16.mxu1 %vm288_vm4, %v570_v23 }
 0x17e   :  { %v543_v25 = vpop.permute.xlu1 %542 }
 0x17f   :  { %v533_v24 = vpop.permute.xlu0 %532  ;;  %561 = vst.msk [vmem:[#allocation4 + $0x38] sm:$0x7f] %vm560_vm13, %v543_v25 }
 0x180   :  { %555 = vst.msk [vmem:[#allocation4 + $0x10] sm:$0xff] %vm552_vm11, %v533_v24 }
 0x182   :  { %v567_v36 = vld [vmem:[#allocation4 + $0x28] sm:$0xff] }
 0x183   :  { %v537_v26 = vpop.permute.xlu0 %536 }
 0x184   :  { %557 = vst.msk [vmem:[#allocation4 + $0x20] sm:$0xff] %vm552_vm11, %v537_v26 }
 0x186   :  { %v569_v39 = vld [vmem:[#allocation4 + $0x38] sm:$0xff] }
 0x187   :  { %v541_v27 = vpop.permute.xlu0 %540  ;;  %v564_v31 = vld [vmem:[#allocation4 + $0x10] sm:$0xff] }
 0x188   :  { %559 = vst.msk [vmem:[#allocation4 + $0x30] sm:$0xff] %vm552_vm11, %v541_v27  ;;  %v571_v34 = vpack.c.bf16 %v565_v33, %v564_v31 }
 0x18a   :  { %2647 = vmatmul.mubr.msk.bf16.vlgmr.msra.gmra.mxu1 %vm288_vm4, %v571_v34  ;;  %v3241_v34 = vld [vmem:[%s3611_s7 + $0x34] ss:$8 sps:$4 sm:$0xff]  }
 0x18b   :  { %v566_v35 = vld [vmem:[#allocation4 + $0x20] sm:$0xff]  ;;  %886 = vmatpush1.bf16.msra.mxu1 %v2729_v63 }
 0x18c   :  { %v572_v37 = vpack.c.bf16 %v567_v36, %v566_v35  ;;  %v2728_v35 = vld [vmem:[%s3609_s5 + $0x8] sm:$0xff]   ;;  %v3249_v36 = vld [vmem:[%s3611_s7 + $0x30] ss:$8 sps:$4 sm:$0xff]  }
 0x18e   :  { %2650 = vmatprep.mubr.msk.bf16.mxu1 %vm288_vm4, %v572_v37  ;;  %v2735_v37 = vld [vmem:[%s3610_s6] ss:$8 sps:$4 sm:$0xff]  }
 0x18f   :  { %v568_v38 = vld [vmem:[#allocation4 + $0x30] sm:$0xff] }
 0x190   :  { %v573_v40 = vpack.c.bf16 %v569_v39, %v568_v38  ;;  %v2737_v38 = vld [vmem:[%s3610_s6 + $0x4] ss:$8 sps:$4 sm:$0xff]  }
 0x191   :  { %887 = vmatprep.subr.bf16.mxu1 %v2737_v38  ;;  %v3263_v39 = vld [vmem:[%s3611_s7 + $0x24] ss:$8 sps:$4 sm:$0xff]  }
 0x192   :  { %2651 = vmatmul.mubr.msk.bf16.gmra.mxu1 %vm288_vm4, %v573_v40  ;;  %v3268_v40 = vld [vmem:[%s3611_s7 + $0x20] ss:$8 sps:$4 sm:$0xff]  }
 0x193   :  { %888 = vmatpush1.bf16.msra.mxu1 %v2735_v37 }
 0x194   :  { %1087 = vmatprep.subr.bf16.mxu1 %v3241_v34 }
 0x24a   :  { %v2648_v41 = vpop.f32.mrf.mxu1 }
 0x24b   :  { %v684_v56 = vadd.f32 %v2648_v41, %v2504_v47  ;;  %v3276_v41 = vld [vmem:[%s3611_s7 + $0x14] ss:$8 sps:$4 sm:$0xff]  }
 0x24c   :  { %v675_v42 = vpop.f32.mrf.mxu1 }
 0x24d   :  { %v676_v59 = vadd.f32 %v2504_v47, %v675_v42  ;;  %v3281_v42 = vld [vmem:[%s3611_s7 + $0x10] ss:$8 sps:$4 sm:$0xff]  }
 0x24e   :  { %v2649_v43 = vpop.f32.mrf.mxu1 }
 0x24f   :  { %v687_v52 = vadd.f32 %v2649_v43, %v2504_v47  ;;  %v2949_v43 = vmov 0  }
 0x250   :  { %v678_v44 = vpop.f32.mrf.mxu1  ;;  %905 = vmatprep.mubr.bf16.mxu1 %v2949_v43 }
 0x251   :  { %v679_v57 = vadd.f32 %v2504_v47, %v678_v44  ;;  %v2702_v60 = vpack.i.bf16 %v687_v52, %v684_v56  ;;  %v3289_v44 = vld [vmem:[%s3611_s7 + $0x4] ss:$8 sps:$4 sm:$0xff]  }
 0x252   :  { %v2652_v45 = vpop.f32.mrf.mxu1 }
 0x253   :  { %v700_v49 = vadd.f32 %v2652_v45, %v2504_v47  ;;  %v2707_v61 = vpack.i.bf16 %v679_v57, %v676_v59  ;;  %v3294_v45 = vld [vmem:[%s3611_s7] ss:$8 sps:$4 sm:$0xff]  }
 0x254   :  { %v691_v46 = vpop.f32.mrf.mxu1 }
 0x255   :  { %v692_v53 = vadd.f32 %v2504_v47, %v691_v46 }
 0x256   :  { %v2653_v48 = vpop.f32.mrf.mxu1 }
 0x257   :  { %v703_v50 = vadd.f32 %v2653_v48, %v2504_v47 }
 0x258   :  { %v694_v51 = vpop.f32.mrf.mxu1 }
 0x259   :  { %v2692_v54 = vpack.i.bf16 %v703_v50, %v700_v49  ;;  %v695_v55 = vadd.f32 %v2504_v47, %v694_v51 }
 0x25b   :  { %v2697_v58 = vpack.i.bf16 %v695_v55, %v692_v53  ;;  %2693 = vrot.lane.b32.xlu0 %v2692_v54, %s2948_s13 }
 0x25d   :  { %2698 = vrot.lane.b32.xlu1 %v2697_v58, %s2948_s13 }
 0x25f   :  { %2703 = vrot.lane.b32.xlu0 %v2702_v60, %s2948_s13 }
 0x261   :  { %2708 = vrot.lane.b32.xlu1 %v2707_v61, %s2948_s13 }
 0x2cd   :  { %v2694_v1 = vpop.permute.xlu0 %2693 }
 0x2ce   :  { %v2696_v2 = vunpack.i.h.bf16 %v2694_v1  ;;  %v2695_v3 = vunpack.i.l.bf16 %v2694_v1 }
 0x2cf   :  { %v2699_v4 = vpop.permute.xlu1 %2698 }
 0x2d0   :  { %v745_v5 = vmax.f32 %v703_v50, %v2696_v2  ;;  %v744_v6 = vmax.f32 %v700_v49, %v2695_v3  ;;  %v2701_v7 = vunpack.i.h.bf16 %v2699_v4  ;;  %v2700_v8 = vunpack.i.l.bf16 %v2699_v4 }
 0x2d1   :  { %v2704_v9 = vpop.permute.xlu0 %2703 }
 0x2d2   :  { %v753_v10 = vmax.f32 %v745_v5, 0.0  ;;  %v752_v12 = vmax.f32 %v744_v6, 0.0  ;;  %v743_v13 = vmax.f32 %v695_v55, %v2701_v7  ;;  %v742_v14 = vmax.f32 %v692_v53, %v2700_v8 }
 0x2d3   :  { %v2706_v15 = vunpack.i.h.bf16 %v2704_v9  ;;  %v2705_v16 = vunpack.i.l.bf16 %v2704_v9  ;;  %v2709_v17 = vpop.permute.xlu1 %2708 }
 0x2d4   :  { %v751_v18 = vmax.f32 %v743_v13, 0.0  ;;  %v750_v19 = vmax.f32 %v742_v14, 0.0  ;;  %v2711_v20 = vunpack.i.h.bf16 %v2709_v17  ;;  %v2710_v28 = vunpack.i.l.bf16 %v2709_v17 }
 0x2d5   :  { %v741_v29 = vmax.f32 %v687_v52, %v2706_v15  ;;  %v740_v30 = vmax.f32 %v684_v56, %v2705_v16  ;;  %v761_v21 = vpack.c.bf16 %v753_v10, %v752_v12  ;;  %v836_v56 = vlaneseq }
 0x2d6   :  { %v760_v22 = vpack.c.bf16 %v751_v18, %v750_v19  ;;  %v739_v24 = vmax.f32 %v679_v57, %v2711_v20  ;;  %v738_v25 = vmax.f32 %v676_v59, %v2710_v28  ;;  %v834_v59 = vld [vmem:[%s3612_s8] sm:$0x3]  ;;  %v2950_v16 = vmov 1.0  }
 0x2d7   :  { %v749_v32 = vmax.f32 %v741_v29, 0.0  ;;  %v748_v23 = vmax.f32 %v740_v30, 0.0  ;;  %2654 = vmatprep.subr.bf16.mxu0 %v761_v21  ;;  %v837_v57 = vshrl.u32 %v836_v56, 7  ;;  %v943_v1 = vand.u32 127, %v836_v56 }
 0x2d8   :  { %2655 = vmatpush3.bf16.msra.mxu0 %v761_v21  ;;  %v747_v26 = vmax.f32 %v739_v24, 0.0  ;;  %v746_v27 = vmax.f32 %v738_v25, 0.0 }
 0x2d9   :  { %2656 = vmatprep.subr.bf16.mxu0 %v760_v22  ;;  %v759_v31 = vpack.c.bf16 %v749_v32, %v748_v23  ;;  %v838_v58 = vsub.s32 0, %v837_v57  ;;  %v842_v60 = vsub.s32 1, %v837_v57  ;;  %v944_v5 = vadd.s32 128, %v943_v1 }
 0x2da   :  { %v758_v33 = vpack.c.bf16 %v747_v26, %v746_v27 }
 0x2db   :  { %v839_v61 = vrot.slane %v834_v59, %v838_v58  ;;  %v843_v62 = vrot.slane %v834_v59, %v842_v60  ;;  %vm948_vm0 = vcmp.lt.s32.totalorder %v944_v5, 192 }
 0x2dc   :  { %2657 = vmatpush3.bf16.msra.mxu0 %v760_v22  ;;  %v3324_v17 = vsel %vm948_vm0, 2.0, %v2950_v16 }
 0x2dd   :  { %2658 = vmatprep.subr.bf16.mxu0 %v759_v31 }
 0x2e0   :  { %2659 = vmatpush3.bf16.msra.mxu0 %v759_v31  ;;  %v3329_v31 = vsel %vm948_vm0, 1.0, %v2942_v11 }
 0x2e1   :  { %2660 = vmatprep.subr.bf16.mxu0 %v758_v33 }
 0x2e4   :  { %2661 = vmatpush3.bf16.msra.mxu0 %v758_v33 }
 0x2e5   :  { %1008 = vmatprep.subr.bf16.mxu0 %v3241_v34 }
 0x2e7   :  { %2663 = vmatmul.mubr.msk.bf16.vlgmr.msra.gmra.mxu0 %vm772_vm14, %v2728_v35 }
 0x2e8   :  { %1009 = vmatpush1.bf16.msra.mxu0 %v3249_v36  ;;  %1032 = vmatprep.mubr.bf16.mxu0 %v2949_v43 }
 0x2e9   :  { %1010 = vmatprep.subr.bf16.mxu0 %v3263_v39 }
 0x2ec   :  { %1011 = vmatpush1.bf16.msra.mxu0 %v3268_v40 }
 0x2ed   :  { %1012 = vmatprep.subr.bf16.mxu0 %v3276_v41 }
 0x2f0   :  { %1013 = vmatpush1.bf16.msra.mxu0 %v3281_v42 }
 0x2f1   :  { %1014 = vmatprep.subr.bf16.mxu0 %v3289_v44 }
 0x2f4   :  { %1015 = vmatpush1.bf16.msra.mxu0 %v3294_v45 }
 0x2f5   :  { %1176 = vmatprep.subr.bf16.mxu0 %v3241_v34 }
 0x2f7   :  { %1033 = vmatmul.mubr.bf16.vlgmr.msra.gmra.mxu0 %v2949_v43 }
 0x2f8   :  { %1177 = vmatpush1.bf16.msra.mxu0 %v3249_v36  ;;  %1200 = vmatprep.mubr.bf16.mxu0 %v2949_v43 }
 0x2f9   :  { %1178 = vmatprep.subr.bf16.mxu0 %v3263_v39 }
 0x2fc   :  { %1179 = vmatpush1.bf16.msra.mxu0 %v3268_v40 }
 0x2fd   :  { %1180 = vmatprep.subr.bf16.mxu0 %v3276_v41 }
 0x300   :  { %1181 = vmatpush1.bf16.msra.mxu0 %v3281_v42 }
 0x301   :  { %1182 = vmatprep.subr.bf16.mxu0 %v3289_v44 }
 0x304   :  { %1183 = vmatpush1.bf16.msra.mxu0 %v3294_v45 }
 0x305   :  { %1354 = vmatprep.subr.bf16.mxu0 %v3241_v34 }
 0x3a7   :  { %v2664_v46 = vpop.f32.mrf.mxu0 }
 0x3a9   :  { %v813_v47 = vpop.f32.mrf.mxu0 }
 0x3ab   :  { %v2665_v48 = vpop.f32.mrf.mxu0 }
 0x3ac   :  { %v829_v51 = vpack.c.bf16 %v2665_v48, %v2664_v46 }
 0x3ad   :  { %v816_v49 = vpop.f32.mrf.mxu0 }
 0x3ae   :  { %v828_v50 = vpack.c.bf16 %v816_v49, %v813_v47 }
 0x3b0   :  { %2523 = vmatmul.mubr.msk.bf16.vlgmr.msra.gmra.mxu1 %vm866_vm15, %v828_v50 }
 0x3b1   :  { %915 = vmatprep.mubr.bf16.mxu1 %v2949_v43  ;;  %1088 = vmatpush1.bf16.msra.mxu1 %v3249_v36 }
 0x3b2   :  { %1089 = vmatprep.subr.bf16.mxu1 %v3263_v39 }
 0x3b5   :  { %1090 = vmatpush1.bf16.msra.mxu1 %v3268_v40 }
 0x3b6   :  { %1091 = vmatprep.subr.bf16.mxu1 %v3276_v41 }
 0x3b7   :  { %v1034_v52 = vpop.f32.mrf.mxu0 }
 0x3b8   :  { %2524 = vmatmul.mubr.msk.bf16.gmra.mxu1 %vm866_vm15, %v829_v51 }
 0x3b9   :  { %1092 = vmatpush1.bf16.msra.mxu1 %v3281_v42  ;;  %1111 = vmatprep.mubr.bf16.mxu1 %v2949_v43  ;;  %v1036_v53 = vpop.f32.mrf.mxu0 }
 0x3ba   :  { %1093 = vmatprep.subr.bf16.mxu1 %v3289_v44 }
 0x3bb   :  { %v1038_v54 = vpop.f32.mrf.mxu0 }
 0x3bd   :  { %1094 = vmatpush1.bf16.msra.mxu1 %v3294_v45  ;;  %v1039_v55 = vpop.f32.mrf.mxu0 }
 0x3be   :  { %1265 = vmatprep.subr.bf16.mxu1 %v3241_v34 }
 0x470   :  { %v907_v63 = vpop.f32.mrf.mxu1 }
 0x471   :  { %v908_v0 = vadd.f32 %v907_v63, %v839_v61 }
 0x472   :  { %v909_v2 = vpop.f32.mrf.mxu1 }
 0x473   :  { %926 = vst [vmem:[#allocation5 + $0x30] sm:$0xff] %v908_v0  ;;  %v910_v3 = vadd.f32 %v909_v2, %v843_v62 }
 0x474   :  { %v911_v4 = vpop.f32.mrf.mxu1 }
 0x475   :  { %927 = vst [vmem:[#allocation5] sm:$0xff] %v910_v3  ;;  %v912_v6 = vadd.f32 %v911_v4, %v839_v61 }
 0x476   :  { %v913_v7 = vpop.f32.mrf.mxu1 }
 0x477   :  { %928 = vst [vmem:[#allocation5 + $0x18] sm:$0xff] %v912_v6  ;;  %v914_v8 = vadd.f32 %v913_v7, %v843_v62 }
 0x478   :  { %v917_v9 = vpop.f32.mrf.mxu1 }
 0x479   :  { %929 = vst [vmem:[#allocation5 + $0x10] sm:$0xff] %v914_v8  ;;  %v918_v10 = vadd.f32 %v917_v9, %v839_v61 }
 0x47a   :  { %v955_v12 = vld [vmem:[#allocation5 + $0x30] sm:$0x3]  ;;  %v919_v13 = vpop.f32.mrf.mxu1  ;;  %v1070_v55 = vld [vmem:[#allocation5 + $0x30] sm:$0xc] }
 0x47b   :  { %v1041_v14 = vadd.f32 %v1034_v52, %v955_v12  ;;  %930 = vst [vmem:[#allocation5 + $0x8] sm:$0xff] %v918_v10  ;;  %v920_v15 = vadd.f32 %v919_v13, %v843_v62 }
 0x47c   :  { %v956_v18 = vld [vmem:[#allocation5] sm:$0x3]  ;;  %v921_v19 = vpop.f32.mrf.mxu1  ;;  %v1071_v59 = vld [vmem:[#allocation5] sm:$0xc] }
 0x47d   :  { %v1042_v20 = vadd.f32 %v1036_v53, %v956_v18  ;;  %931 = vst [vmem:[#allocation5 + $0x20] sm:$0xff] %v920_v15  ;;  %v922_v28 = vadd.f32 %v921_v19, %v839_v61  ;;  %v2533_v29 = vmul.f32 -1.442695, %v1041_v14 }
 0x47e   :  { %v923_v30 = vpop.f32.mrf.mxu1 }
 0x47f   :  { %v1044_v21 = vmul.f32 %v1042_v20, %v3324_v17  ;;  %932 = vst [vmem:[#allocation5 + $0x28] sm:$0xff] %v922_v28  ;;  %v924_v22 = vadd.f32 %v923_v30, %v843_v62  ;;  %2751 = vpow2.f32 %v2533_v29 }
 0x481   :  { %v2534_v32 = vmul.f32 -1.442695, %v1044_v21  ;;  %933 = vst [vmem:[#allocation5 + $0x38] sm:$0xff] %v924_v22  ;;  %v1158_v21 = vld [vmem:[#allocation5 + $0x30] sm:$0x30] }
 0x483   :  { %2753 = vpow2.f32 %v2534_v32 }
 0x48c   :  { %v2752_v23 = vpop.eup %2751 }
 0x48d   :  { %v1051_v26 = vadd.f32 1.0, %v2752_v23 }
 0x490   :  { %v2754_v24 = vpop.eup %2753 }
 0x491   :  { %v1052_v25 = vadd.f32 1.0, %v2754_v24  ;;  %v1159_v24 = vld [vmem:[#allocation5] sm:$0x30] }
 0x493   :  { %2755 = vrcp.f32 %v1052_v25 }
 0x494   :  { %2757 = vrcp.f32 %v1051_v26 }
 0x4a0   :  { %v2756_v27 = vpop.eup %2755 }
 0x4a1   :  { %v1058_v33 = vmul.f32 %v2756_v27, %v3324_v17  ;;  %v2758_v37 = vpop.eup %2757 }
 0x4a2   :  { %v1061_v46 = vmul.f32 0.0, %v2758_v37 }
 0x4a3   :  { %v1060_v35 = vsub.f32 %v1058_v33, %v3329_v31 }
 0x4a5   :  { %v1062_v38 = vmul.f32 %v2758_v37, %v1060_v35 }
 0x4a7   :  { %1064 = vrot.lane.b32.xlu0 %v1062_v38, %s2946_s0 }
 0x519   :  { %v1065_v47 = vpop.permute.xlu0 %1064 }
 0x51a   :  { %v1067_v48 = vadd.f32 %v1065_v47, %v1061_v46 }
 0x51c   :  { %2759 = vtanh.f32 %v1067_v48  ;;  %v1147_v6 = vrot.slane %v1067_v48, 6 }
 0x529   :  { %v2760_v49 = vpop.eup %2759 }
 0x52a   :  { %v1069_v50 = vmul.f32 %v2760_v49, %v1060_v35 }
 0x52c   :  { %v1072_v51 = vpack.c.bf16 %v1069_v50, %v1069_v50 }
 0x52e   :  { %1074 = vrot.lane.b32.xlu1 %v1072_v51, %s2946_s0 }
 0x5a0   :  { %v1075_v52 = vpop.permute.xlu1 %1074 }
 0x5a1   :  { %2535 = vmatmul.mubr.msk.bf16.vlgmr.msra.gmra.mxu1 %vm772_vm14, %v1075_v52 }
 0x5a2   :  { %1266 = vmatpush1.bf16.msra.mxu1 %v3249_v36  ;;  %1289 = vmatprep.mubr.bf16.mxu1 %v2949_v43 }
 0x5a3   :  { %1267 = vmatprep.subr.bf16.mxu1 %v3263_v39 }
 0x5a6   :  { %1268 = vmatpush1.bf16.msra.mxu1 %v3268_v40 }
 0x5a7   :  { %1269 = vmatprep.subr.bf16.mxu1 %v3276_v41 }
 0x5aa   :  { %1270 = vmatpush1.bf16.msra.mxu1 %v3281_v42 }
 0x5ab   :  { %1271 = vmatprep.subr.bf16.mxu1 %v3289_v44 }
 0x5ae   :  { %1272 = vmatpush1.bf16.msra.mxu1 %v3294_v45 }
 0x5af   :  { %1436 = vmatprep.subr.bf16.mxu1 %v3241_v34 }
 0x661   :  { %v1113_v53 = vpop.f32.mrf.mxu1 }
 0x662   :  { %v1122_v54 = vrot.slane %v1113_v53, 6 }
 0x663   :  { %v1115_v56 = vpop.f32.mrf.mxu1 }
 0x664   :  { %v1126_v57 = vadd.f32 %v1122_v54, %v1070_v55  ;;  %v1123_v58 = vrot.slane %v1115_v56, 6 }
 0x665   :  { %v1117_v60 = vpop.f32.mrf.mxu1 }
 0x666   :  { %v2536_v61 = vmul.f32 -1.442695, %v1126_v57  ;;  %v1127_v62 = vadd.f32 %v1123_v58, %v1071_v59 }
 0x667   :  { %v1118_v63 = vpop.f32.mrf.mxu1 }
 0x668   :  { %2761 = vpow2.f32 %v2536_v61  ;;  %v1129_v0 = vmul.f32 %v1127_v62, %v3324_v17 }
 0x66a   :  { %v2537_v1 = vmul.f32 -1.442695, %v1129_v0 }
 0x66c   :  { %2763 = vpow2.f32 %v2537_v1  ;;  %v1247_v1 = vld [vmem:[#allocation5 + $0x30] sm:$0xc0] }
 0x675   :  { %v2762_v2 = vpop.eup %2761 }
 0x676   :  { %v1136_v3 = vadd.f32 1.0, %v2762_v2 }
 0x678   :  { %2765 = vrcp.f32 %v1136_v3 }
 0x679   :  { %v2764_v4 = vpop.eup %2763 }
 0x67a   :  { %v1137_v5 = vadd.f32 1.0, %v2764_v4 }
 0x67c   :  { %2767 = vrcp.f32 %v1137_v5  ;;  %v1248_v5 = vld [vmem:[#allocation5] sm:$0xc0] }
 0x685   :  { %v2766_v7 = vpop.eup %2765 }
 0x686   :  { %v1149_v8 = vmul.f32 %v2766_v7, %v1147_v6 }
 0x689   :  { %v2768_v9 = vpop.eup %2767 }
 0x68a   :  { %v1143_v10 = vmul.f32 %v2768_v9, %v3324_v17 }
 0x68c   :  { %v1145_v12 = vsub.f32 %v1143_v10, %v3329_v31 }
 0x68e   :  { %v1150_v13 = vmul.f32 %v2766_v7, %v1145_v12 }
 0x690   :  { %1152 = vrot.lane.b32.xlu0 %v1150_v13, %s2946_s0 }
 0x702   :  { %v1153_v14 = vpop.permute.xlu0 %1152 }
 0x703   :  { %v1155_v15 = vadd.f32 %v1153_v14, %v1149_v8 }
 0x705   :  { %2769 = vtanh.f32 %v1155_v15  ;;  %v1236_v49 = vrot.slane %v1155_v15, 6 }
 0x712   :  { %v2770_v16 = vpop.eup %2769 }
 0x713   :  { %v1157_v18 = vmul.f32 %v2770_v16, %v1145_v12 }
 0x715   :  { %v1160_v19 = vpack.c.bf16 %v1157_v18, %v1157_v18 }
 0x717   :  { %v1162_v20 = vrot.slane %v1160_v19, 1 }
 0x719   :  { %1163 = vrot.lane.b32.xlu1 %v1162_v20, %s2946_s0 }
 0x78b   :  { %v1164_v28 = vpop.permute.xlu1 %1163 }
 0x78c   :  { %2538 = vmatmul.mubr.msk.bf16.vlgmr.msra.gmra.mxu0 %vm772_vm14, %v1164_v28 }
 0x78d   :  { %1355 = vmatpush1.bf16.msra.mxu0 %v3249_v36  ;;  %1378 = vmatprep.mubr.bf16.mxu0 %v2949_v43 }
 0x78e   :  { %1356 = vmatprep.subr.bf16.mxu0 %v3263_v39 }
 0x791   :  { %1357 = vmatpush1.bf16.msra.mxu0 %v3268_v40 }
 0x792   :  { %1358 = vmatprep.subr.bf16.mxu0 %v3276_v41 }
 0x795   :  { %1359 = vmatpush1.bf16.msra.mxu0 %v3281_v42 }
 0x796   :  { %1360 = vmatprep.subr.bf16.mxu0 %v3289_v44 }
 0x799   :  { %1361 = vmatpush1.bf16.msra.mxu0 %v3294_v45 }
 0x79a   :  { %1525 = vmatprep.subr.bf16.mxu0 %v3241_v34 }
 0x84c   :  { %v1202_v29 = vpop.f32.mrf.mxu0 }
 0x84d   :  { %v1211_v30 = vrot.slane %v1202_v29, 4 }
 0x84e   :  { %v1204_v22 = vpop.f32.mrf.mxu0 }
 0x84f   :  { %v1215_v32 = vadd.f32 %v1211_v30, %v1158_v21  ;;  %v1212_v23 = vrot.slane %v1204_v22, 4 }
 0x850   :  { %v1206_v25 = vpop.f32.mrf.mxu0 }
 0x851   :  { %v2539_v26 = vmul.f32 -1.442695, %v1215_v32  ;;  %v1216_v27 = vadd.f32 %v1212_v23, %v1159_v24 }
 0x852   :  { %v1207_v33 = vpop.f32.mrf.mxu0 }
 0x853   :  { %2771 = vpow2.f32 %v2539_v26  ;;  %v1218_v35 = vmul.f32 %v1216_v27, %v3324_v17  ;;  %v1336_v33 = vld [vmem:[#allocation5 + $0x18] sm:$0x3] }
 0x855   :  { %v2540_v37 = vmul.f32 -1.442695, %v1218_v35 }
 0x857   :  { %2773 = vpow2.f32 %v2540_v37 }
 0x860   :  { %v2772_v38 = vpop.eup %2771 }
 0x861   :  { %v1225_v46 = vadd.f32 1.0, %v2772_v38  ;;  %v1337_v38 = vld [vmem:[#allocation5 + $0x10] sm:$0x3] }
 0x863   :  { %2775 = vrcp.f32 %v1225_v46 }
 0x864   :  { %v2774_v47 = vpop.eup %2773 }
 0x865   :  { %v1226_v48 = vadd.f32 1.0, %v2774_v47 }
 0x867   :  { %2777 = vrcp.f32 %v1226_v48 }
 0x870   :  { %v2776_v50 = vpop.eup %2775 }
 0x871   :  { %v1238_v51 = vmul.f32 %v2776_v50, %v1236_v49 }
 0x874   :  { %v2778_v52 = vpop.eup %2777 }
 0x875   :  { %v1232_v53 = vmul.f32 %v2778_v52, %v3324_v17 }
 0x877   :  { %v1234_v54 = vsub.f32 %v1232_v53, %v3329_v31 }
 0x879   :  { %v1239_v55 = vmul.f32 %v2776_v50, %v1234_v54 }
 0x87b   :  { %1241 = vrot.lane.b32.xlu0 %v1239_v55, %s2946_s0 }
 0x8ed   :  { %v1242_v56 = vpop.permute.xlu0 %1241 }
 0x8ee   :  { %v1244_v57 = vadd.f32 %v1242_v56, %v1238_v51 }
 0x8f0   :  { %2779 = vtanh.f32 %v1244_v57  ;;  %v1325_v18 = vrot.slane %v1244_v57, 6 }
 0x8fd   :  { %v2780_v58 = vpop.eup %2779 }
 0x8fe   :  { %v1246_v59 = vmul.f32 %v2780_v58, %v1234_v54 }
 0x900   :  { %v1249_v60 = vpack.c.bf16 %v1246_v59, %v1246_v59 }
 0x902   :  { %v1251_v61 = vrot.slane %v1249_v60, 2 }
 0x904   :  { %1252 = vrot.lane.b32.xlu1 %v1251_v61, %s2946_s0 }
 0x976   :  { %v1253_v62 = vpop.permute.xlu1 %1252 }
 0x977   :  { %2541 = vmatmul.mubr.msk.bf16.vlgmr.msra.gmra.mxu1 %vm772_vm14, %v1253_v62 }
 0x978   :  { %1437 = vmatpush1.bf16.msra.mxu1 %v3249_v36  ;;  %1460 = vmatprep.mubr.bf16.mxu1 %v2949_v43 }
 0x979   :  { %1438 = vmatprep.subr.bf16.mxu1 %v3263_v39 }
 0x97c   :  { %1439 = vmatpush1.bf16.msra.mxu1 %v3268_v40 }
 0x97d   :  { %1440 = vmatprep.subr.bf16.mxu1 %v3276_v41 }
 0x980   :  { %1441 = vmatpush1.bf16.msra.mxu1 %v3281_v42 }
 0x981   :  { %1442 = vmatprep.subr.bf16.mxu1 %v3289_v44 }
 0x984   :  { %1443 = vmatpush1.bf16.msra.mxu1 %v3294_v45 }
 0x985   :  { %1614 = vmatprep.subr.bf16.mxu1 %v3241_v34 }
 0xa37   :  { %v1291_v63 = vpop.f32.mrf.mxu1 }
 0xa38   :  { %v1300_v0 = vrot.slane %v1291_v63, 2 }
 0xa39   :  { %v1293_v2 = vpop.f32.mrf.mxu1 }
 0xa3a   :  { %v1304_v3 = vadd.f32 %v1300_v0, %v1247_v1  ;;  %v1301_v4 = vrot.slane %v1293_v2, 2 }
 0xa3b   :  { %v1295_v6 = vpop.f32.mrf.mxu1 }
 0xa3c   :  { %v2542_v7 = vmul.f32 -1.442695, %v1304_v3  ;;  %v1305_v8 = vadd.f32 %v1301_v4, %v1248_v5 }
 0xa3d   :  { %v1296_v9 = vpop.f32.mrf.mxu1 }
 0xa3e   :  { %2781 = vpow2.f32 %v2542_v7  ;;  %v1307_v10 = vmul.f32 %v1305_v8, %v3324_v17  ;;  %v1419_v8 = vld [vmem:[#allocation5 + $0x18] sm:$0xc] }
 0xa40   :  { %v2543_v12 = vmul.f32 -1.442695, %v1307_v10 }
 0xa42   :  { %2783 = vpow2.f32 %v2543_v12 }
 0xa4b   :  { %v2782_v13 = vpop.eup %2781 }
 0xa4c   :  { %v1314_v14 = vadd.f32 1.0, %v2782_v13  ;;  %v1420_v13 = vld [vmem:[#allocation5 + $0x10] sm:$0xc] }
 0xa4e   :  { %2785 = vrcp.f32 %v1314_v14 }
 0xa4f   :  { %v2784_v15 = vpop.eup %2783 }
 0xa50   :  { %v1315_v16 = vadd.f32 1.0, %v2784_v15 }
 0xa52   :  { %2787 = vrcp.f32 %v1315_v16 }
 0xa5b   :  { %v2786_v19 = vpop.eup %2785 }
 0xa5c   :  { %v1327_v20 = vmul.f32 %v2786_v19, %v1325_v18 }
 0xa5f   :  { %v2788_v28 = vpop.eup %2787 }
 0xa60   :  { %v1321_v29 = vmul.f32 %v2788_v28, %v3324_v17 }
 0xa62   :  { %v1323_v30 = vsub.f32 %v1321_v29, %v3329_v31 }
 0xa64   :  { %v1328_v21 = vmul.f32 %v2786_v19, %v1323_v30 }
 0xa66   :  { %1330 = vrot.lane.b32.xlu0 %v1328_v21, %s2946_s0 }
 0xad8   :  { %v1331_v22 = vpop.permute.xlu0 %1330 }
 0xad9   :  { %v1333_v32 = vadd.f32 %v1331_v22, %v1327_v20 }
 0xadb   :  { %2789 = vtanh.f32 %v1333_v32  ;;  %v1408_v57 = vrot.slane %v1333_v32, 6 }
 0xae8   :  { %v2790_v23 = vpop.eup %2789 }
 0xae9   :  { %v1335_v24 = vmul.f32 %v2790_v23, %v1323_v30 }
 0xaeb   :  { %v1338_v25 = vpack.c.bf16 %v1335_v24, %v1335_v24 }
 0xaed   :  { %v1340_v26 = vrot.slane %v1338_v25, 3 }
 0xaef   :  { %1341 = vrot.lane.b32.xlu1 %v1340_v26, %s2946_s0 }
 0xb61   :  { %v1342_v27 = vpop.permute.xlu1 %1341 }
 0xb62   :  { %2544 = vmatmul.mubr.msk.bf16.vlgmr.msra.gmra.mxu0 %vm772_vm14, %v1342_v27 }
 0xb63   :  { %1526 = vmatpush1.bf16.msra.mxu0 %v3249_v36  ;;  %1549 = vmatprep.mubr.bf16.mxu0 %v2949_v43 }
 0xb64   :  { %1527 = vmatprep.subr.bf16.mxu0 %v3263_v39 }
 0xb67   :  { %1528 = vmatpush1.bf16.msra.mxu0 %v3268_v40 }
 0xb68   :  { %1529 = vmatprep.subr.bf16.mxu0 %v3276_v41 }
 0xb6b   :  { %1530 = vmatpush1.bf16.msra.mxu0 %v3281_v42 }
 0xb6c   :  { %1531 = vmatprep.subr.bf16.mxu0 %v3289_v44 }
 0xb6f   :  { %1532 = vmatpush1.bf16.msra.mxu0 %v3294_v45 }
 0xb70   :  { %1703 = vmatprep.subr.bf16.mxu0 %v3241_v34 }
 0xc22   :  { %v1380_v35 = vpop.f32.mrf.mxu0 }
 0xc23   :  { %v1387_v37 = vadd.f32 %v1380_v35, %v1336_v33 }
 0xc24   :  { %v1382_v46 = vpop.f32.mrf.mxu0 }
 0xc25   :  { %v2545_v47 = vmul.f32 -1.442695, %v1387_v37  ;;  %v1388_v48 = vadd.f32 %v1382_v46, %v1337_v38 }
 0xc26   :  { %v1384_v49 = vpop.f32.mrf.mxu0 }
 0xc27   :  { %2791 = vpow2.f32 %v2545_v47  ;;  %v1390_v50 = vmul.f32 %v1388_v48, %v3324_v17 }
 0xc28   :  { %v1385_v51 = vpop.f32.mrf.mxu0 }
 0xc29   :  { %v2546_v52 = vmul.f32 -1.442695, %v1390_v50  ;;  %v1507_v51 = vld [vmem:[#allocation5 + $0x18] sm:$0x30] }
 0xc2b   :  { %2793 = vpow2.f32 %v2546_v52 }
 0xc34   :  { %v2792_v53 = vpop.eup %2791 }
 0xc35   :  { %v1397_v54 = vadd.f32 1.0, %v2792_v53 }
 0xc37   :  { %2795 = vrcp.f32 %v1397_v54 }
 0xc38   :  { %v2794_v55 = vpop.eup %2793 }
 0xc39   :  { %v1398_v56 = vadd.f32 1.0, %v2794_v55  ;;  %v1508_v55 = vld [vmem:[#allocation5 + $0x10] sm:$0x30] }
 0xc3b   :  { %2797 = vrcp.f32 %v1398_v56 }
 0xc44   :  { %v2796_v58 = vpop.eup %2795 }
 0xc45   :  { %v1410_v59 = vmul.f32 %v2796_v58, %v1408_v57 }
 0xc48   :  { %v2798_v60 = vpop.eup %2797 }
 0xc49   :  { %v1404_v61 = vmul.f32 %v2798_v60, %v3324_v17 }
 0xc4b   :  { %v1406_v62 = vsub.f32 %v1404_v61, %v3329_v31 }
 0xc4d   :  { %v1411_v63 = vmul.f32 %v2796_v58, %v1406_v62 }
 0xc4f   :  { %1413 = vrot.lane.b32.xlu0 %v1411_v63, %s2946_s0 }
 0xcc1   :  { %v1414_v0 = vpop.permute.xlu0 %1413 }
 0xcc2   :  { %v1416_v1 = vadd.f32 %v1414_v0, %v1410_v59 }
 0xcc4   :  { %2799 = vtanh.f32 %v1416_v1  ;;  %v1496_v22 = vrot.slane %v1416_v1, 6 }
 0xcd1   :  { %v2800_v2 = vpop.eup %2799 }
 0xcd2   :  { %v1418_v3 = vmul.f32 %v2800_v2, %v1406_v62 }
 0xcd4   :  { %v1421_v4 = vpack.c.bf16 %v1418_v3, %v1418_v3 }
 0xcd6   :  { %1423 = vrot.lane.b32.xlu1 %v1421_v4, %s2946_s0 }
 0xd48   :  { %v1424_v5 = vpop.permute.xlu1 %1423 }
 0xd49   :  { %2547 = vmatmul.mubr.msk.bf16.vlgmr.msra.gmra.mxu1 %vm772_vm14, %v1424_v5 }
 0xd4a   :  { %1615 = vmatpush1.bf16.msra.mxu1 %v3249_v36  ;;  %1638 = vmatprep.mubr.bf16.mxu1 %v2949_v43 }
 0xd4b   :  { %1616 = vmatprep.subr.bf16.mxu1 %v3263_v39 }
 0xd4e   :  { %1617 = vmatpush1.bf16.msra.mxu1 %v3268_v40 }
 0xd4f   :  { %1618 = vmatprep.subr.bf16.mxu1 %v3276_v41 }
 0xd52   :  { %1619 = vmatpush1.bf16.msra.mxu1 %v3281_v42 }
 0xd53   :  { %1620 = vmatprep.subr.bf16.mxu1 %v3289_v44 }
 0xd56   :  { %1621 = vmatpush1.bf16.msra.mxu1 %v3294_v45 }
 0xd57   :  { %1785 = vmatprep.subr.bf16.mxu1 %v3241_v34 }
 0xe09   :  { %v1462_v6 = vpop.f32.mrf.mxu1 }
 0xe0a   :  { %v1471_v7 = vrot.slane %v1462_v6, 6 }
 0xe0b   :  { %v1464_v9 = vpop.f32.mrf.mxu1 }
 0xe0c   :  { %v1475_v10 = vadd.f32 %v1471_v7, %v1419_v8  ;;  %v1472_v12 = vrot.slane %v1464_v9, 6 }
 0xe0d   :  { %v1466_v14 = vpop.f32.mrf.mxu1 }
 0xe0e   :  { %v2548_v15 = vmul.f32 -1.442695, %v1475_v10  ;;  %v1476_v16 = vadd.f32 %v1472_v12, %v1420_v13 }
 0xe0f   :  { %v1467_v18 = vpop.f32.mrf.mxu1 }
 0xe10   :  { %2801 = vpow2.f32 %v2548_v15  ;;  %v1478_v19 = vmul.f32 %v1476_v16, %v3324_v17 }
 0xe12   :  { %v2549_v20 = vmul.f32 -1.442695, %v1478_v19 }
 0xe14   :  { %2803 = vpow2.f32 %v2549_v20  ;;  %v1596_v20 = vld [vmem:[#allocation5 + $0x18] sm:$0xc0] }
 0xe1d   :  { %v2802_v28 = vpop.eup %2801 }
 0xe1e   :  { %v1485_v29 = vadd.f32 1.0, %v2802_v28 }
 0xe20   :  { %2805 = vrcp.f32 %v1485_v29 }
 0xe21   :  { %v2804_v30 = vpop.eup %2803 }
 0xe22   :  { %v1486_v21 = vadd.f32 1.0, %v2804_v30 }
 0xe24   :  { %2807 = vrcp.f32 %v1486_v21  ;;  %v1597_v21 = vld [vmem:[#allocation5 + $0x10] sm:$0xc0] }
 0xe2d   :  { %v2806_v32 = vpop.eup %2805 }
 0xe2e   :  { %v1498_v23 = vmul.f32 %v2806_v32, %v1496_v22 }
 0xe31   :  { %v2808_v24 = vpop.eup %2807 }
 0xe32   :  { %v1492_v25 = vmul.f32 %v2808_v24, %v3324_v17 }
 0xe34   :  { %v1494_v26 = vsub.f32 %v1492_v25, %v3329_v31 }
 0xe36   :  { %v1499_v27 = vmul.f32 %v2806_v32, %v1494_v26 }
 0xe38   :  { %1501 = vrot.lane.b32.xlu0 %v1499_v27, %s2946_s0 }
 0xeaa   :  { %v1502_v33 = vpop.permute.xlu0 %1501 }
 0xeab   :  { %v1504_v35 = vadd.f32 %v1502_v33, %v1498_v23 }
 0xead   :  { %2809 = vtanh.f32 %v1504_v35  ;;  %v1585_v2 = vrot.slane %v1504_v35, 6 }
 0xeba   :  { %v2810_v37 = vpop.eup %2809 }
 0xebb   :  { %v1506_v38 = vmul.f32 %v2810_v37, %v1494_v26 }
 0xebd   :  { %v1509_v46 = vpack.c.bf16 %v1506_v38, %v1506_v38 }
 0xebf   :  { %v1511_v47 = vrot.slane %v1509_v46, 1 }
 0xec1   :  { %1512 = vrot.lane.b32.xlu1 %v1511_v47, %s2946_s0 }
 0xf33   :  { %v1513_v48 = vpop.permute.xlu1 %1512 }
 0xf34   :  { %2550 = vmatmul.mubr.msk.bf16.vlgmr.msra.gmra.mxu0 %vm772_vm14, %v1513_v48 }
 0xf35   :  { %1704 = vmatpush1.bf16.msra.mxu0 %v3249_v36  ;;  %1727 = vmatprep.mubr.bf16.mxu0 %v2949_v43 }
 0xf36   :  { %1705 = vmatprep.subr.bf16.mxu0 %v3263_v39 }
 0xf39   :  { %1706 = vmatpush1.bf16.msra.mxu0 %v3268_v40 }
 0xf3a   :  { %1707 = vmatprep.subr.bf16.mxu0 %v3276_v41 }
 0xf3d   :  { %1708 = vmatpush1.bf16.msra.mxu0 %v3281_v42 }
 0xf3e   :  { %1709 = vmatprep.subr.bf16.mxu0 %v3289_v44 }
 0xf41   :  { %1710 = vmatpush1.bf16.msra.mxu0 %v3294_v45 }
 0xf42   :  { %1874 = vmatprep.subr.bf16.mxu0 %v3241_v34 }
 0xff4   :  { %v1551_v49 = vpop.f32.mrf.mxu0 }
 0xff5   :  { %v1560_v50 = vrot.slane %v1551_v49, 4 }
 0xff6   :  { %v1553_v52 = vpop.f32.mrf.mxu0 }
 0xff7   :  { %v1564_v53 = vadd.f32 %v1560_v50, %v1507_v51  ;;  %v1561_v54 = vrot.slane %v1553_v52, 4 }
 0xff8   :  { %v1555_v56 = vpop.f32.mrf.mxu0 }
 0xff9   :  { %v2551_v57 = vmul.f32 -1.442695, %v1564_v53  ;;  %v1565_v58 = vadd.f32 %v1561_v54, %v1508_v55 }
 0xffa   :  { %v1556_v59 = vpop.f32.mrf.mxu0 }
 0xffb   :  { %2811 = vpow2.f32 %v2551_v57  ;;  %v1567_v60 = vmul.f32 %v1565_v58, %v3324_v17  ;;  %v1685_v59 = vld [vmem:[#allocation5 + $0x8] sm:$0x3] }
 0xffd   :  { %v2552_v61 = vmul.f32 -1.442695, %v1567_v60 }
 0xfff   :  { %2813 = vpow2.f32 %v2552_v61 }
0x1008   :  { %v2812_v62 = vpop.eup %2811 }
0x1009   :  { %v1574_v63 = vadd.f32 1.0, %v2812_v62  ;;  %v1686_v62 = vld [vmem:[#allocation5 + $0x20] sm:$0x3] }
0x100b   :  { %2815 = vrcp.f32 %v1574_v63 }
0x100c   :  { %v2814_v0 = vpop.eup %2813 }
0x100d   :  { %v1575_v1 = vadd.f32 1.0, %v2814_v0 }
0x100f   :  { %2817 = vrcp.f32 %v1575_v1 }
0x1018   :  { %v2816_v3 = vpop.eup %2815 }
0x1019   :  { %v1587_v4 = vmul.f32 %v2816_v3, %v1585_v2 }
0x101c   :  { %v2818_v5 = vpop.eup %2817 }
0x101d   :  { %v1581_v6 = vmul.f32 %v2818_v5, %v3324_v17 }
0x101f   :  { %v1583_v7 = vsub.f32 %v1581_v6, %v3329_v31 }
0x1021   :  { %v1588_v8 = vmul.f32 %v2816_v3, %v1583_v7 }
0x1023   :  { %1590 = vrot.lane.b32.xlu0 %v1588_v8, %s2946_s0 }
0x1095   :  { %v1591_v9 = vpop.permute.xlu0 %1590 }
0x1096   :  { %v1593_v10 = vadd.f32 %v1591_v9, %v1587_v4 }
0x1098   :  { %2819 = vtanh.f32 %v1593_v10  ;;  %v1674_v38 = vrot.slane %v1593_v10, 6 }
0x10a5   :  { %v2820_v12 = vpop.eup %2819 }
0x10a6   :  { %v1595_v13 = vmul.f32 %v2820_v12, %v1583_v7 }
0x10a8   :  { %v1598_v14 = vpack.c.bf16 %v1595_v13, %v1595_v13 }
0x10aa   :  { %v1600_v15 = vrot.slane %v1598_v14, 2 }
0x10ac   :  { %1601 = vrot.lane.b32.xlu1 %v1600_v15, %s2946_s0 }
0x111e   :  { %v1602_v16 = vpop.permute.xlu1 %1601 }
0x111f   :  { %2553 = vmatmul.mubr.msk.bf16.vlgmr.msra.gmra.mxu1 %vm772_vm14, %v1602_v16 }
0x1120   :  { %1786 = vmatpush1.bf16.msra.mxu1 %v3249_v36  ;;  %1809 = vmatprep.mubr.bf16.mxu1 %v2949_v43 }
0x1121   :  { %1787 = vmatprep.subr.bf16.mxu1 %v3263_v39 }
0x1124   :  { %1788 = vmatpush1.bf16.msra.mxu1 %v3268_v40 }
0x1125   :  { %1789 = vmatprep.subr.bf16.mxu1 %v3276_v41 }
0x1128   :  { %1790 = vmatpush1.bf16.msra.mxu1 %v3281_v42 }
0x1129   :  { %1791 = vmatprep.subr.bf16.mxu1 %v3289_v44 }
0x112c   :  { %1792 = vmatpush1.bf16.msra.mxu1 %v3294_v45 }
0x112d   :  { %1963 = vmatprep.subr.bf16.mxu1 %v3241_v34 }
0x11df   :  { %v1640_v18 = vpop.f32.mrf.mxu1 }
0x11e0   :  { %v1649_v19 = vrot.slane %v1640_v18, 2 }
0x11e1   :  { %v1642_v28 = vpop.f32.mrf.mxu1 }
0x11e2   :  { %v1653_v29 = vadd.f32 %v1649_v19, %v1596_v20  ;;  %v1650_v30 = vrot.slane %v1642_v28, 2 }
0x11e3   :  { %v1644_v22 = vpop.f32.mrf.mxu1 }
0x11e4   :  { %v2554_v32 = vmul.f32 -1.442695, %v1653_v29  ;;  %v1654_v23 = vadd.f32 %v1650_v30, %v1597_v21  ;;  %v3467_v21 = vld [vmem:[%s3611_s7 + $0x34] ss:$8 sps:$4 sm:$0xff]  }
0x11e5   :  { %v1645_v24 = vpop.f32.mrf.mxu1 }
0x11e6   :  { %2821 = vpow2.f32 %v2554_v32  ;;  %v1656_v25 = vmul.f32 %v1654_v23, %v3324_v17 }
0x11e8   :  { %v2555_v26 = vmul.f32 -1.442695, %v1656_v25 }
0x11ea   :  { %2823 = vpow2.f32 %v2555_v26 }
0x11f3   :  { %v2822_v27 = vpop.eup %2821 }
0x11f4   :  { %v1663_v33 = vadd.f32 1.0, %v2822_v27 }
0x11f6   :  { %2825 = vrcp.f32 %v1663_v33 }
0x11f7   :  { %v2824_v35 = vpop.eup %2823 }
0x11f8   :  { %v1664_v37 = vadd.f32 1.0, %v2824_v35 }
0x11fa   :  { %2827 = vrcp.f32 %v1664_v37 }
0x1203   :  { %v2826_v46 = vpop.eup %2825 }
0x1204   :  { %v1676_v47 = vmul.f32 %v2826_v46, %v1674_v38 }
0x1207   :  { %v2828_v48 = vpop.eup %2827 }
0x1208   :  { %v1670_v49 = vmul.f32 %v2828_v48, %v3324_v17 }
0x120a   :  { %v1672_v50 = vsub.f32 %v1670_v49, %v3329_v31 }
0x120c   :  { %v1677_v51 = vmul.f32 %v2826_v46, %v1672_v50 }
0x120e   :  { %1679 = vrot.lane.b32.xlu0 %v1677_v51, %s2946_s0 }
0x1280   :  { %v1680_v52 = vpop.permute.xlu0 %1679 }
0x1281   :  { %v1682_v53 = vadd.f32 %v1680_v52, %v1676_v47 }
0x1283   :  { %2829 = vtanh.f32 %v1682_v53 }
0x1290   :  { %v2830_v54 = vpop.eup %2829 }
0x1291   :  { %v1684_v55 = vmul.f32 %v2830_v54, %v1672_v50 }
0x1293   :  { %v1687_v56 = vpack.c.bf16 %v1684_v55, %v1684_v55 }
0x1295   :  { %v1689_v57 = vrot.slane %v1687_v56, 3 }
0x1297   :  { %1690 = vrot.lane.b32.xlu1 %v1689_v57, %s2946_s0 }
0x1309   :  { %v1691_v58 = vpop.permute.xlu1 %1690 }
0x130a   :  { %2556 = vmatmul.mubr.msk.bf16.vlgmr.msra.gmra.mxu0 %vm772_vm14, %v1691_v58 }
0x130b   :  { %1875 = vmatpush1.bf16.msra.mxu0 %v3249_v36  ;;  %1898 = vmatprep.mubr.bf16.mxu0 %v2949_v43 }
0x130c   :  { %1876 = vmatprep.subr.bf16.mxu0 %v3263_v39 }
0x130f   :  { %1877 = vmatpush1.bf16.msra.mxu0 %v3268_v40 }
0x1310   :  { %1878 = vmatprep.subr.bf16.mxu0 %v3276_v41 }
0x1313   :  { %1879 = vmatpush1.bf16.msra.mxu0 %v3281_v42 }
0x1314   :  { %1880 = vmatprep.subr.bf16.mxu0 %v3289_v44 }
0x1317   :  { %1881 = vmatpush1.bf16.msra.mxu0 %v3294_v45 }
0x1318   :  { %2052 = vmatprep.subr.bf16.mxu0 %v3241_v34  ;;  %v1757_v34 = vrot.slane %v1682_v53, 6 }
0x13ca   :  { %v1729_v60 = vpop.f32.mrf.mxu0 }
0x13cb   :  { %v1736_v61 = vadd.f32 %v1729_v60, %v1685_v59  ;;  %v3479_v59 = vld [vmem:[%s3611_s7 + $0x30] ss:$8 sps:$4 sm:$0xff]   ;;  %v3486_v60 = vld [vmem:[%s3611_s7 + $0x24] ss:$8 sps:$4 sm:$0xff]  }
0x13cc   :  { %v1731_v63 = vpop.f32.mrf.mxu0 }
0x13cd   :  { %v2557_v0 = vmul.f32 -1.442695, %v1736_v61  ;;  %v1737_v1 = vadd.f32 %v1731_v63, %v1686_v62  ;;  %v3492_v61 = vld [vmem:[%s3611_s7 + $0x20] ss:$8 sps:$4 sm:$0xff]   ;;  %v3498_v62 = vld [vmem:[%s3611_s7 + $0x14] ss:$8 sps:$4 sm:$0xff]  }
0x13ce   :  { %v1733_v2 = vpop.f32.mrf.mxu0  ;;  %v3504_v63 = vld [vmem:[%s3611_s7 + $0x10] ss:$8 sps:$4 sm:$0xff]  }
0x13cf   :  { %2831 = vpow2.f32 %v2557_v0  ;;  %v1739_v3 = vmul.f32 %v1737_v1, %v3324_v17  ;;  %v3510_v0 = vld [vmem:[%s3611_s7 + $0x4] ss:$8 sps:$4 sm:$0xff]   ;;  %v3516_v1 = vld [vmem:[%s3611_s7] ss:$8 sps:$4 sm:$0xff]  }
0x13d0   :  { %v1734_v4 = vpop.f32.mrf.mxu0 }
0x13d1   :  { %v2558_v5 = vmul.f32 -1.442695, %v1739_v3  ;;  %v1856_v4 = vld [vmem:[#allocation5 + $0x8] sm:$0x30] }
0x13d3   :  { %2833 = vpow2.f32 %v2558_v5 }
0x13dc   :  { %v2832_v6 = vpop.eup %2831 }
0x13dd   :  { %v1746_v7 = vadd.f32 1.0, %v2832_v6 }
0x13df   :  { %2835 = vrcp.f32 %v1746_v7 }
0x13e0   :  { %v2834_v8 = vpop.eup %2833 }
0x13e1   :  { %v1747_v9 = vadd.f32 1.0, %v2834_v8  ;;  %v1857_v8 = vld [vmem:[#allocation5 + $0x20] sm:$0x30] }
0x13e3   :  { %2837 = vrcp.f32 %v1747_v9 }
0x13ec   :  { %v2836_v10 = vpop.eup %2835 }
0x13ed   :  { %v1759_v12 = vmul.f32 %v2836_v10, %v1757_v34 }
0x13f0   :  { %v2838_v13 = vpop.eup %2837 }
0x13f1   :  { %v1753_v14 = vmul.f32 %v2838_v13, %v3324_v17 }
0x13f3   :  { %v1755_v15 = vsub.f32 %v1753_v14, %v3329_v31 }
0x13f5   :  { %v1760_v16 = vmul.f32 %v2836_v10, %v1755_v15 }
0x13f7   :  { %1762 = vrot.lane.b32.xlu0 %v1760_v16, %s2946_s0 }
0x1469   :  { %v1763_v18 = vpop.permute.xlu0 %1762 }
0x146a   :  { %v1765_v19 = vadd.f32 %v1763_v18, %v1759_v12 }
0x146c   :  { %2839 = vtanh.f32 %v1765_v19  ;;  %v1845_v38 = vrot.slane %v1765_v19, 6 }
0x1479   :  { %v2840_v20 = vpop.eup %2839 }
0x147a   :  { %v1767_v28 = vmul.f32 %v2840_v20, %v1755_v15 }
0x147c   :  { %v1770_v29 = vpack.c.bf16 %v1767_v28, %v1767_v28 }
0x147e   :  { %1772 = vrot.lane.b32.xlu1 %v1770_v29, %s2946_s0 }
0x14f0   :  { %v1773_v30 = vpop.permute.xlu1 %1772 }
0x14f1   :  { %2559 = vmatmul.mubr.msk.bf16.vlgmr.msra.gmra.mxu1 %vm772_vm14, %v1773_v30 }
0x14f2   :  { %1964 = vmatpush1.bf16.msra.mxu1 %v3249_v36  ;;  %1987 = vmatprep.mubr.bf16.mxu1 %v2949_v43 }
0x14f3   :  { %1965 = vmatprep.subr.bf16.mxu1 %v3263_v39  ;;  %v1768_v39 = vld [vmem:[#allocation5 + $0x8] sm:$0xc] }
0x14f6   :  { %1966 = vmatpush1.bf16.msra.mxu1 %v3268_v40 }
0x14f7   :  { %1967 = vmatprep.subr.bf16.mxu1 %v3276_v41  ;;  %v1769_v41 = vld [vmem:[#allocation5 + $0x20] sm:$0xc] }
0x14fa   :  { %1968 = vmatpush1.bf16.msra.mxu1 %v3281_v42 }
0x14fb   :  { %1969 = vmatprep.subr.bf16.mxu1 %v3289_v44 }
0x14fe   :  { %1970 = vmatpush1.bf16.msra.mxu1 %v3294_v45 }
0x14ff   :  { %2134 = vmatprep.subr.bf16.mxu1 %v3467_v21 }
0x15b1   :  { %v1811_v36 = vpop.f32.mrf.mxu1 }
0x15b2   :  { %v1820_v22 = vrot.slane %v1811_v36, 6 }
0x15b3   :  { %v1813_v32 = vpop.f32.mrf.mxu1 }
0x15b4   :  { %v1824_v40 = vadd.f32 %v1820_v22, %v1768_v39  ;;  %v1821_v23 = vrot.slane %v1813_v32, 6 }
0x15b5   :  { %v1815_v24 = vpop.f32.mrf.mxu1 }
0x15b6   :  { %v2560_v42 = vmul.f32 -1.442695, %v1824_v40  ;;  %v1825_v25 = vadd.f32 %v1821_v23, %v1769_v41 }
0x15b7   :  { %v1816_v44 = vpop.f32.mrf.mxu1 }
0x15b8   :  { %2841 = vpow2.f32 %v2560_v42  ;;  %v1827_v45 = vmul.f32 %v1825_v25, %v3324_v17 }
0x15ba   :  { %v2561_v26 = vmul.f32 -1.442695, %v1827_v45 }
0x15bc   :  { %2843 = vpow2.f32 %v2561_v26  ;;  %v1945_v26 = vld [vmem:[#allocation5 + $0x8] sm:$0xc0] }
0x15c5   :  { %v2842_v27 = vpop.eup %2841 }
0x15c6   :  { %v1834_v33 = vadd.f32 1.0, %v2842_v27 }
0x15c8   :  { %2845 = vrcp.f32 %v1834_v33 }
0x15c9   :  { %v2844_v35 = vpop.eup %2843 }
0x15ca   :  { %v1835_v37 = vadd.f32 1.0, %v2844_v35 }
0x15cc   :  { %2847 = vrcp.f32 %v1835_v37  ;;  %v1946_v37 = vld [vmem:[#allocation5 + $0x20] sm:$0xc0] }
0x15d5   :  { %v2846_v46 = vpop.eup %2845 }
0x15d6   :  { %v1847_v47 = vmul.f32 %v2846_v46, %v1845_v38 }
0x15d9   :  { %v2848_v48 = vpop.eup %2847 }
0x15da   :  { %v1841_v49 = vmul.f32 %v2848_v48, %v3324_v17 }
0x15dc   :  { %v1843_v50 = vsub.f32 %v1841_v49, %v3329_v31 }
0x15de   :  { %v1848_v51 = vmul.f32 %v2846_v46, %v1843_v50 }
0x15e0   :  { %1850 = vrot.lane.b32.xlu0 %v1848_v51, %s2946_s0 }
0x1652   :  { %v1851_v52 = vpop.permute.xlu0 %1850 }
0x1653   :  { %v1853_v53 = vadd.f32 %v1851_v52, %v1847_v47 }
0x1655   :  { %2849 = vtanh.f32 %v1853_v53  ;;  %v1934_v20 = vrot.slane %v1853_v53, 6 }
0x1662   :  { %v2850_v54 = vpop.eup %2849 }
0x1663   :  { %v1855_v55 = vmul.f32 %v2850_v54, %v1843_v50 }
0x1665   :  { %v1858_v56 = vpack.c.bf16 %v1855_v55, %v1855_v55 }
0x1667   :  { %v1860_v57 = vrot.slane %v1858_v56, 1 }
0x1669   :  { %1861 = vrot.lane.b32.xlu1 %v1860_v57, %s2946_s0 }
0x16db   :  { %v1862_v58 = vpop.permute.xlu1 %1861 }
0x16dc   :  { %2562 = vmatmul.mubr.msk.bf16.vlgmr.msra.gmra.mxu0 %vm772_vm14, %v1862_v58 }
0x16dd   :  { %2053 = vmatpush1.bf16.msra.mxu0 %v3479_v59  ;;  %2076 = vmatprep.mubr.bf16.mxu0 %v2949_v43 }
0x16de   :  { %2054 = vmatprep.subr.bf16.mxu0 %v3486_v60 }
0x16e1   :  { %2055 = vmatpush1.bf16.msra.mxu0 %v3492_v61 }
0x16e2   :  { %2056 = vmatprep.subr.bf16.mxu0 %v3498_v62 }
0x16e5   :  { %2057 = vmatpush1.bf16.msra.mxu0 %v3504_v63 }
0x16e6   :  { %2058 = vmatprep.subr.bf16.mxu0 %v3510_v0 }
0x16e9   :  { %2059 = vmatpush1.bf16.msra.mxu0 %v3516_v1 }
0x16ea   :  { %2223 = vmatprep.subr.bf16.mxu0 %v3467_v21 }
0x179c   :  { %v1900_v2 = vpop.f32.mrf.mxu0 }
0x179d   :  { %v1909_v3 = vrot.slane %v1900_v2, 4 }
0x179e   :  { %v1902_v5 = vpop.f32.mrf.mxu0 }
0x179f   :  { %v1913_v6 = vadd.f32 %v1909_v3, %v1856_v4  ;;  %v1910_v7 = vrot.slane %v1902_v5, 4 }
0x17a0   :  { %v1904_v9 = vpop.f32.mrf.mxu0 }
0x17a1   :  { %v2563_v34 = vmul.f32 -1.442695, %v1913_v6  ;;  %v1914_v10 = vadd.f32 %v1910_v7, %v1857_v8 }
0x17a2   :  { %v1905_v12 = vpop.f32.mrf.mxu0 }
0x17a3   :  { %2851 = vpow2.f32 %v2563_v34  ;;  %v1916_v13 = vmul.f32 %v1914_v10, %v3324_v17  ;;  %v2034_v10 = vld [vmem:[#allocation5 + $0x28] sm:$0x3] }
0x17a5   :  { %v2564_v14 = vmul.f32 -1.442695, %v1916_v13 }
0x17a7   :  { %2853 = vpow2.f32 %v2564_v14  ;;  %v2035_v14 = vld [vmem:[#allocation5 + $0x38] sm:$0x3] }
0x17b0   :  { %v2852_v15 = vpop.eup %2851 }
0x17b1   :  { %v1923_v16 = vadd.f32 1.0, %v2852_v15 }
0x17b3   :  { %2855 = vrcp.f32 %v1923_v16 }
0x17b4   :  { %v2854_v18 = vpop.eup %2853 }
0x17b5   :  { %v1924_v19 = vadd.f32 1.0, %v2854_v18 }
0x17b7   :  { %2857 = vrcp.f32 %v1924_v19 }
0x17c0   :  { %v2856_v28 = vpop.eup %2855 }
0x17c1   :  { %v1936_v29 = vmul.f32 %v2856_v28, %v1934_v20 }
0x17c4   :  { %v2858_v30 = vpop.eup %2857 }
0x17c5   :  { %v1930_v36 = vmul.f32 %v2858_v30, %v3324_v17 }
0x17c7   :  { %v1932_v22 = vsub.f32 %v1930_v36, %v3329_v31 }
0x17c9   :  { %v1937_v39 = vmul.f32 %v2856_v28, %v1932_v22 }
0x17cb   :  { %1939 = vrot.lane.b32.xlu0 %v1937_v39, %s2946_s0 }
0x183d   :  { %v1940_v32 = vpop.permute.xlu0 %1939 }
0x183e   :  { %v1942_v40 = vadd.f32 %v1940_v32, %v1936_v29 }
0x1840   :  { %2859 = vtanh.f32 %v1942_v40  ;;  %v2023_v54 = vrot.slane %v1942_v40, 6 }
0x184d   :  { %v2860_v23 = vpop.eup %2859 }
0x184e   :  { %v1944_v41 = vmul.f32 %v2860_v23, %v1932_v22 }
0x1850   :  { %v1947_v24 = vpack.c.bf16 %v1944_v41, %v1944_v41 }
0x1852   :  { %v1949_v42 = vrot.slane %v1947_v24, 2 }
0x1854   :  { %1950 = vrot.lane.b32.xlu1 %v1949_v42, %s2946_s0 }
0x18c6   :  { %v1951_v25 = vpop.permute.xlu1 %1950 }
0x18c7   :  { %2565 = vmatmul.mubr.msk.bf16.vlgmr.msra.gmra.mxu1 %vm772_vm14, %v1951_v25 }
0x18c8   :  { %2135 = vmatpush1.bf16.msra.mxu1 %v3479_v59  ;;  %2158 = vmatprep.mubr.bf16.mxu1 %v2949_v43 }
0x18c9   :  { %2136 = vmatprep.subr.bf16.mxu1 %v3486_v60 }
0x18cc   :  { %2137 = vmatpush1.bf16.msra.mxu1 %v3492_v61 }
0x18cd   :  { %2138 = vmatprep.subr.bf16.mxu1 %v3498_v62 }
0x18d0   :  { %2139 = vmatpush1.bf16.msra.mxu1 %v3504_v63 }
0x18d1   :  { %2140 = vmatprep.subr.bf16.mxu1 %v3510_v0 }
0x18d4   :  { %2141 = vmatpush1.bf16.msra.mxu1 %v3516_v1 }
0x18d5   :  { %2312 = vmatprep.subr.bf16.mxu1 %v3467_v21 }
0x1987   :  { %v1989_v44 = vpop.f32.mrf.mxu1 }
0x1988   :  { %v1998_v45 = vrot.slane %v1989_v44, 2 }
0x1989   :  { %v1991_v27 = vpop.f32.mrf.mxu1 }
0x198a   :  { %v2002_v33 = vadd.f32 %v1998_v45, %v1945_v26  ;;  %v1999_v35 = vrot.slane %v1991_v27, 2 }
0x198b   :  { %v1993_v38 = vpop.f32.mrf.mxu1 }
0x198c   :  { %v2566_v46 = vmul.f32 -1.442695, %v2002_v33  ;;  %v2003_v47 = vadd.f32 %v1999_v35, %v1946_v37 }
0x198d   :  { %v1994_v48 = vpop.f32.mrf.mxu1 }
0x198e   :  { %2861 = vpow2.f32 %v2566_v46  ;;  %v2005_v49 = vmul.f32 %v2003_v47, %v3324_v17  ;;  %v2117_v46 = vld [vmem:[#allocation5 + $0x28] sm:$0xc] }
0x1990   :  { %v2567_v50 = vmul.f32 -1.442695, %v2005_v49  ;;  %v2118_v49 = vld [vmem:[#allocation5 + $0x38] sm:$0xc] }
0x1992   :  { %2863 = vpow2.f32 %v2567_v50 }
0x199b   :  { %v2862_v51 = vpop.eup %2861 }
0x199c   :  { %v2012_v52 = vadd.f32 1.0, %v2862_v51 }
0x199e   :  { %2865 = vrcp.f32 %v2012_v52 }
0x199f   :  { %v2864_v21 = vpop.eup %2863 }
0x19a0   :  { %v2013_v53 = vadd.f32 1.0, %v2864_v21 }
0x19a2   :  { %2867 = vrcp.f32 %v2013_v53 }
0x19ab   :  { %v2866_v55 = vpop.eup %2865 }
0x19ac   :  { %v2025_v56 = vmul.f32 %v2866_v55, %v2023_v54 }
0x19af   :  { %v2868_v57 = vpop.eup %2867 }
0x19b0   :  { %v2019_v58 = vmul.f32 %v2868_v57, %v3324_v17 }
0x19b2   :  { %v2021_v2 = vsub.f32 %v2019_v58, %v3329_v31 }
0x19b4   :  { %v2026_v3 = vmul.f32 %v2866_v55, %v2021_v2 }
0x19b6   :  { %2028 = vrot.lane.b32.xlu0 %v2026_v3, %s2946_s0 }
0x1a28   :  { %v2029_v4 = vpop.permute.xlu0 %2028 }
0x1a29   :  { %v2031_v5 = vadd.f32 %v2029_v4, %v2025_v56 }
0x1a2b   :  { %2869 = vtanh.f32 %v2031_v5  ;;  %v2106_v32 = vrot.slane %v2031_v5, 6 }
0x1a38   :  { %v2870_v6 = vpop.eup %2869 }
0x1a39   :  { %v2033_v7 = vmul.f32 %v2870_v6, %v2021_v2 }
0x1a3b   :  { %v2036_v8 = vpack.c.bf16 %v2033_v7, %v2033_v7 }
0x1a3d   :  { %v2038_v9 = vrot.slane %v2036_v8, 3 }
0x1a3f   :  { %2039 = vrot.lane.b32.xlu1 %v2038_v9, %s2946_s0 }
0x1ab1   :  { %v2040_v34 = vpop.permute.xlu1 %2039 }
0x1ab2   :  { %2568 = vmatmul.mubr.msk.bf16.vlgmr.msra.gmra.mxu0 %vm772_vm14, %v2040_v34 }
0x1ab3   :  { %2224 = vmatpush1.bf16.msra.mxu0 %v3479_v59  ;;  %2247 = vmatprep.mubr.bf16.mxu0 %v2949_v43 }
0x1ab4   :  { %2225 = vmatprep.subr.bf16.mxu0 %v3486_v60 }
0x1ab7   :  { %2226 = vmatpush1.bf16.msra.mxu0 %v3492_v61 }
0x1ab8   :  { %2227 = vmatprep.subr.bf16.mxu0 %v3498_v62 }
0x1abb   :  { %2228 = vmatpush1.bf16.msra.mxu0 %v3504_v63 }
0x1abc   :  { %2229 = vmatprep.subr.bf16.mxu0 %v3510_v0 }
0x1abf   :  { %2230 = vmatpush1.bf16.msra.mxu0 %v3516_v1 }
0x1ac0   :  { %2666 = vmatprep.subr.bf16.mxu0 %v2942_v11 }
0x1b72   :  { %v2078_v12 = vpop.f32.mrf.mxu0 }
0x1b73   :  { %v2085_v13 = vadd.f32 %v2078_v12, %v2034_v10  ;;  %v2205_v10 = vld [vmem:[#allocation5 + $0x28] sm:$0x30] }
0x1b74   :  { %v2080_v15 = vpop.f32.mrf.mxu0 }
0x1b75   :  { %v2569_v16 = vmul.f32 -1.442695, %v2085_v13  ;;  %v2086_v18 = vadd.f32 %v2080_v15, %v2035_v14  ;;  %v2206_v15 = vld [vmem:[#allocation5 + $0x38] sm:$0x30] }
0x1b76   :  { %v2082_v19 = vpop.f32.mrf.mxu0 }
0x1b77   :  { %2871 = vpow2.f32 %v2569_v16  ;;  %v2088_v20 = vmul.f32 %v2086_v18, %v3324_v17 }
0x1b78   :  { %v2083_v28 = vpop.f32.mrf.mxu0 }
0x1b79   :  { %v2570_v29 = vmul.f32 -1.442695, %v2088_v20 }
0x1b7b   :  { %2873 = vpow2.f32 %v2570_v29 }
0x1b84   :  { %v2872_v30 = vpop.eup %2871 }
0x1b85   :  { %v2095_v36 = vadd.f32 1.0, %v2872_v30 }
0x1b87   :  { %2875 = vrcp.f32 %v2095_v36 }
0x1b88   :  { %v2874_v22 = vpop.eup %2873 }
0x1b89   :  { %v2096_v39 = vadd.f32 1.0, %v2874_v22 }
0x1b8b   :  { %2877 = vrcp.f32 %v2096_v39 }
0x1b94   :  { %v2876_v40 = vpop.eup %2875 }
0x1b95   :  { %v2108_v23 = vmul.f32 %v2876_v40, %v2106_v32 }
0x1b98   :  { %v2878_v41 = vpop.eup %2877 }
0x1b99   :  { %v2102_v24 = vmul.f32 %v2878_v41, %v3324_v17 }
0x1b9b   :  { %v2104_v42 = vsub.f32 %v2102_v24, %v3329_v31 }
0x1b9d   :  { %v2109_v25 = vmul.f32 %v2876_v40, %v2104_v42 }
0x1b9f   :  { %2111 = vrot.lane.b32.xlu0 %v2109_v25, %s2946_s0 }
0x1c11   :  { %v2112_v44 = vpop.permute.xlu0 %2111 }
0x1c12   :  { %v2114_v45 = vadd.f32 %v2112_v44, %v2108_v23 }
0x1c14   :  { %2879 = vtanh.f32 %v2114_v45  ;;  %v2194_v21 = vrot.slane %v2114_v45, 6 }
0x1c21   :  { %v2880_v26 = vpop.eup %2879 }
0x1c22   :  { %v2116_v27 = vmul.f32 %v2880_v26, %v2104_v42 }
0x1c24   :  { %v2119_v33 = vpack.c.bf16 %v2116_v27, %v2116_v27 }
0x1c26   :  { %2121 = vrot.lane.b32.xlu1 %v2119_v33, %s2946_s0 }
0x1c98   :  { %v2122_v35 = vpop.permute.xlu1 %2121 }
0x1c99   :  { %2571 = vmatmul.mubr.msk.bf16.vlgmr.msra.gmra.mxu1 %vm772_vm14, %v2122_v35 }
0x1c9a   :  { %2313 = vmatpush1.bf16.msra.mxu1 %v3479_v59  ;;  %2336 = vmatprep.mubr.bf16.mxu1 %v2949_v43 }
0x1c9b   :  { %2314 = vmatprep.subr.bf16.mxu1 %v3486_v60 }
0x1c9e   :  { %2315 = vmatpush1.bf16.msra.mxu1 %v3492_v61 }
0x1c9f   :  { %2316 = vmatprep.subr.bf16.mxu1 %v3498_v62 }
0x1ca2   :  { %2317 = vmatpush1.bf16.msra.mxu1 %v3504_v63 }
0x1ca3   :  { %2318 = vmatprep.subr.bf16.mxu1 %v3510_v0 }
0x1ca6   :  { %2319 = vmatpush1.bf16.msra.mxu1 %v3516_v1 }
0x1d59   :  { %v2160_v37 = vpop.f32.mrf.mxu1 }
0x1d5a   :  { %v2169_v38 = vrot.slane %v2160_v37, 6 }
0x1d5b   :  { %v2162_v47 = vpop.f32.mrf.mxu1 }
0x1d5c   :  { %v2173_v48 = vadd.f32 %v2169_v38, %v2117_v46  ;;  %v2170_v59 = vrot.slane %v2162_v47, 6  ;;  %v2294_v47 = vld [vmem:[#allocation5 + $0x28] sm:$0xc0] }
0x1d5d   :  { %v2164_v43 = vpop.f32.mrf.mxu1 }
0x1d5e   :  { %v2572_v50 = vmul.f32 -1.442695, %v2173_v48  ;;  %v2174_v60 = vadd.f32 %v2170_v59, %v2118_v49  ;;  %v2295_v43 = vld [vmem:[#allocation5 + $0x38] sm:$0xc0] }
0x1d5f   :  { %v2165_v51 = vpop.f32.mrf.mxu1 }
0x1d60   :  { %2881 = vpow2.f32 %v2572_v50  ;;  %v2176_v61 = vmul.f32 %v2174_v60, %v3324_v17 }
0x1d62   :  { %v2573_v62 = vmul.f32 -1.442695, %v2176_v61 }
0x1d64   :  { %2883 = vpow2.f32 %v2573_v62 }
0x1d6d   :  { %v2882_v63 = vpop.eup %2881 }
0x1d6e   :  { %v2183_v0 = vadd.f32 1.0, %v2882_v63 }
0x1d70   :  { %2885 = vrcp.f32 %v2183_v0 }
0x1d71   :  { %v2884_v1 = vpop.eup %2883 }
0x1d72   :  { %v2184_v52 = vadd.f32 1.0, %v2884_v1 }
0x1d74   :  { %2887 = vrcp.f32 %v2184_v52 }
0x1d7d   :  { %v2886_v53 = vpop.eup %2885 }
0x1d7e   :  { %v2196_v54 = vmul.f32 %v2886_v53, %v2194_v21 }
0x1d81   :  { %v2888_v55 = vpop.eup %2887 }
0x1d82   :  { %v2190_v56 = vmul.f32 %v2888_v55, %v3324_v17 }
0x1d84   :  { %v2192_v57 = vsub.f32 %v2190_v56, %v3329_v31 }
0x1d86   :  { %v2197_v58 = vmul.f32 %v2886_v53, %v2192_v57 }
0x1d88   :  { %2199 = vrot.lane.b32.xlu0 %v2197_v58, %s2946_s0 }
0x1dfa   :  { %v2200_v2 = vpop.permute.xlu0 %2199 }
0x1dfb   :  { %v2202_v3 = vadd.f32 %v2200_v2, %v2196_v54 }
0x1dfd   :  { %2889 = vtanh.f32 %v2202_v3  ;;  %v2283_v32 = vrot.slane %v2202_v3, 6  ;;  %v2747_v3 = vld [vmem:[%s3613_s9 + $0x18] sm:$0xff]  }
0x1e0a   :  { %v2890_v4 = vpop.eup %2889 }
0x1e0b   :  { %v2204_v5 = vmul.f32 %v2890_v4, %v2192_v57  ;;  %v2748_v4 = vld [vmem:[%s3613_s9 + $0x10] sm:$0xff]  }
0x1e0d   :  { %v2207_v6 = vpack.c.bf16 %v2204_v5, %v2204_v5 }
0x1e0f   :  { %v2209_v7 = vrot.slane %v2207_v6, 1 }
0x1e11   :  { %2210 = vrot.lane.b32.xlu1 %v2209_v7, %s2946_s0 }
0x1e83   :  { %v2211_v8 = vpop.permute.xlu1 %2210 }
0x1e84   :  { %2574 = vmatmul.mubr.msk.bf16.vlgmr.msra.gmra.mxu0 %vm772_vm14, %v2211_v8 }
0x1e85   :  { %2674 = vmatprep.mubr.msk.bf16.mxu0 %vm2951_vm1, %v2942_v11  ;;  %2667 = vmatpush3.bf16.msra.mxu0 %v2747_v3 }
0x1e86   :  { %2668 = vmatprep.subr.bf16.mxu0 %v2942_v11 }
0x1e89   :  { %2669 = vmatpush3.bf16.msra.mxu0 %v2748_v4 }
0x1e8a   :  { %2670 = vmatprep.subr.bf16.mxu0 %v2942_v11 }
0x1f44   :  { %v2249_v9 = vpop.f32.mrf.mxu0 }
0x1f45   :  { %v2258_v34 = vrot.slane %v2249_v9, 4 }
0x1f46   :  { %v2251_v12 = vpop.f32.mrf.mxu0 }
0x1f47   :  { %v2262_v13 = vadd.f32 %v2258_v34, %v2205_v10  ;;  %v2259_v14 = vrot.slane %v2251_v12, 4  ;;  %v2580_v12 = vld [vmem:[%s3614_s10] ss:$0 sm:$0xff] }
0x1f48   :  { %v2253_v16 = vpop.f32.mrf.mxu0 }
0x1f49   :  { %v2575_v18 = vmul.f32 -1.442695, %v2262_v13  ;;  %v2263_v19 = vadd.f32 %v2259_v14, %v2206_v15 }
0x1f4a   :  { %v2254_v20 = vpop.f32.mrf.mxu0 }
0x1f4b   :  { %2891 = vpow2.f32 %v2575_v18  ;;  %v2265_v28 = vmul.f32 %v2263_v19, %v3324_v17 }
0x1f4d   :  { %v2576_v29 = vmul.f32 -1.442695, %v2265_v28 }
0x1f4f   :  { %2893 = vpow2.f32 %v2576_v29 }
0x1f58   :  { %v2892_v30 = vpop.eup %2891 }
0x1f59   :  { %v2272_v36 = vadd.f32 1.0, %v2892_v30 }
0x1f5b   :  { %2895 = vrcp.f32 %v2272_v36 }
0x1f5c   :  { %v2894_v22 = vpop.eup %2893 }
0x1f5d   :  { %v2273_v39 = vadd.f32 1.0, %v2894_v22 }
0x1f5f   :  { %2897 = vrcp.f32 %v2273_v39 }
0x1f68   :  { %v2896_v40 = vpop.eup %2895 }
0x1f69   :  { %v2285_v23 = vmul.f32 %v2896_v40, %v2283_v32 }
0x1f6c   :  { %v2898_v41 = vpop.eup %2897 }
0x1f6d   :  { %v2279_v24 = vmul.f32 %v2898_v41, %v3324_v17 }
0x1f6f   :  { %v2281_v42 = vsub.f32 %v2279_v24, %v3329_v31 }
0x1f71   :  { %v2286_v25 = vmul.f32 %v2896_v40, %v2281_v42 }
0x1f73   :  { %2288 = vrot.lane.b32.xlu0 %v2286_v25, %s2946_s0 }
0x1fe5   :  { %v2289_v44 = vpop.permute.xlu0 %2288 }
0x1fe6   :  { %v2291_v45 = vadd.f32 %v2289_v44, %v2285_v23 }
0x1fe8   :  { %2899 = vtanh.f32 %v2291_v45  ;;  %v2372_v53 = vrot.slane %v2291_v45, 6 }
0x1ff5   :  { %v2900_v26 = vpop.eup %2899 }
0x1ff6   :  { %v2293_v27 = vmul.f32 %v2900_v26, %v2281_v42 }
0x1ff8   :  { %v2296_v33 = vpack.c.bf16 %v2293_v27, %v2293_v27 }
0x1ffa   :  { %v2298_v35 = vrot.slane %v2296_v33, 2 }
0x1ffc   :  { %2299 = vrot.lane.b32.xlu1 %v2298_v35, %s2946_s0 }
0x206e   :  { %v2300_v37 = vpop.permute.xlu1 %2299 }
0x206f   :  { %2577 = vmatmul.mubr.msk.bf16.vlgmr.msra.gmra.mxu1 %vm772_vm14, %v2300_v37 }
0x212f   :  { %v2338_v38 = vpop.f32.mrf.mxu1 }
0x2130   :  { %v2347_v46 = vrot.slane %v2338_v38, 2 }
0x2131   :  { %v2340_v48 = vpop.f32.mrf.mxu1 }
0x2132   :  { %v2351_v59 = vadd.f32 %v2347_v46, %v2294_v47  ;;  %v2348_v49 = vrot.slane %v2340_v48, 2 }
0x2133   :  { %v2342_v50 = vpop.f32.mrf.mxu1 }
0x2134   :  { %v2578_v60 = vmul.f32 -1.442695, %v2351_v59  ;;  %v2352_v51 = vadd.f32 %v2348_v49, %v2295_v43 }
0x2135   :  { %v2343_v61 = vpop.f32.mrf.mxu1 }
0x2136   :  { %2901 = vpow2.f32 %v2578_v60  ;;  %v2354_v62 = vmul.f32 %v2352_v51, %v3324_v17 }
0x2138   :  { %v2579_v63 = vmul.f32 -1.442695, %v2354_v62 }
0x213a   :  { %2903 = vpow2.f32 %v2579_v63 }
0x2143   :  { %v2902_v0 = vpop.eup %2901 }
0x2144   :  { %v2361_v1 = vadd.f32 1.0, %v2902_v0 }
0x2146   :  { %2905 = vrcp.f32 %v2361_v1 }
0x2147   :  { %v2904_v52 = vpop.eup %2903 }
0x2148   :  { %v2362_v21 = vadd.f32 1.0, %v2904_v52 }
0x214a   :  { %2907 = vrcp.f32 %v2362_v21 }
0x2153   :  { %v2906_v54 = vpop.eup %2905 }
0x2154   :  { %v2374_v55 = vmul.f32 %v2906_v54, %v2372_v53 }
0x2157   :  { %v2908_v56 = vpop.eup %2907 }
0x2158   :  { %v2368_v57 = vmul.f32 %v2908_v56, %v3324_v17  ;;  %v2749_v17 = vld [vmem:[%s3613_s9 + $0x8] sm:$0xff]  }
0x2159   :  { %2671 = vmatpush3.bf16.msra.mxu0 %v2749_v17 }
0x215a   :  { %v2370_v58 = vsub.f32 %v2368_v57, %v3329_v31  ;;  %v2750_v31 = vld [vmem:[%s3613_s9] sm:$0xff]   ;;  %2672 = vmatprep.subr.bf16.mxu0 %v2942_v11  ;;  %s2952_s9 = smov [#allocation6]  }
0x215b   :  { %s2478_s17 = sshll.u32 %s2952_s9, 4  ;;  %s2479_s17 = int_to_ptr.vmem [resolvable:$true] %s2478_s17 }
0x215c   :  { %v2375_v2 = vmul.f32 %v2906_v54, %v2370_v58  ;;  %s2919_s8 = scalar_lea.vmem %s2479_s17, 32  ;;  %p2924_p1 = scmp.lt.s32.totalorder %s2479_s17, %s2479_s17 }
0x215d   :  { %2673 = vmatpush3.bf16.msra.mxu0 %v2750_v31  ;;  %p2920_p0 = scmp.ne.s32.totalorder %s2479_s17, %s2919_s8  ;;  %p2925_p2 = scmp.lt.s32.totalorder %s2919_s8, %s2919_s8 }
0x215e   :  { %2377 = vrot.lane.b32.xlu0 %v2375_v2, %s2946_s0 }
0x215f   :  { %p2926_p3 = por %p2925_p2, %p2924_p1 }
0x2161   :  { %p2927_p4 = pnand %p2926_p3, %p2920_p0 }
0x21d0   :  { %v2378_v5 = vpop.permute.xlu0 %2377 }
0x21d1   :  { %v2380_v6 = vadd.f32 %v2378_v5, %v2374_v55 }
0x21d3   :  { %2909 = vtanh.f32 %v2380_v6 }
0x21e0   :  { %v2910_v7 = vpop.eup %2909 }
0x21e1   :  { %v2382_v8 = vmul.f32 %v2910_v7, %v2370_v58 }
0x21e3   :  { %v2383_v9 = vpack.c.bf16 %v2382_v8, %v2382_v8 }
0x21e5   :  { %v2400_v34 = vrot.slane %v2383_v9, 3 }
0x21e7   :  { %2401 = vrot.lane.b32.xlu1 %v2400_v34, %s2946_s0 }
0x2259   :  { %v2402_v10 = vpop.permute.xlu1 %2401 }
0x225a   :  { %2675 = vmatmul.mubr.msk.bf16.vlgmr.msra.gmra.mxu0 %vm772_vm14, %v2402_v10 }
0x231a   :  { %v2464_v11 = vpop.f32.mrf.mxu0 }
0x231b   :  { %v2465_v13 = vadd.f32 %v2580_v12, %v2464_v11 }
0x231c   :  { %v2676_v14 = vpop.f32.mrf.mxu0 }
0x231d   :  { %2471 = vst.msk [vmem:[#allocation6] sm:$0x3] %vm2470_vm2, %v2465_v13 }
0x231e   :  { %v2467_v15 = vpop.f32.mrf.mxu0 }
0x231f   :  { %2930 = shalt.err (!%p2927_p4)
}
0x2320   :  { %2481 = dma.vmem_to_hbm [thread:$0]  %s2479_s17, 32, %s3615_s11, [#allocation7]   ;;  %v2677_v16 = vpop.f32.mrf.mxu0 }
0x2321   :  { %2939 = dma.done.wait [#allocation7], 32  }
0x2322   :  { %2940 = vsyncadd [#allocation7], 4294967264 }
0x2323   :  { %2485 = vsyncpa [#allocation7], 1 }

</bundles_post_ra>
